<compile_context>
chip_gen: v6e
topology: v6e:2x2x1
jax: 0.10.0
libtpu: 0.0.40
codegen_flags: <defaults>
</compile_context>

<pallas_src>
import jax
import jax.numpy as jnp
from jax.experimental import pallas as pl
from jax.experimental.pallas import tpu as pltpu

# ----------------------------- config ---------------------------------------
B = 2            # batch
L = 8            # max_text_len (29 -> pad to 32 at full size; already 8-aligned here)
H = 32           # hidden_size (768 in the original)
NH = 2           # attention heads
DH = H // NH     # head dim
I = 64           # BERT intermediate size
NLAYERS = 2      # BERT encoder layers
VOCAB = 50
FILTER = 8       # filter_size (250 in the original; pad to 256 at full size)
WINDOWS = (1, 2, 3)
LN_EPS = 1e-12
SCALE = 1.0 / (DH ** 0.5)
NEG_INF = float("-inf")


# ----------------------------- fused kernel ----------------------------------
def _bert_cnn_kernel(emb_ref, madd_ref, embg_ref, embb_ref,
                     wqkv_ref, bqkv_ref, wo_ref, bo_ref, ln1g_ref, ln1b_ref,
                     w1_ref, b1_ref, w2_ref, b2_ref, ln2g_ref, ln2b_ref,
                     wc1_ref, bc1_ref, wc2_ref, bc2_ref, wc3_ref, bc3_ref,
                     wfc_ref, bfc_ref,
                     out_ref, x_scr):
    layer = pl.program_id(1)
    last = pl.num_programs(1) - 1

    def layernorm(h, g, b):
        mu = jnp.mean(h, axis=-1, keepdims=True)
        var = jnp.mean(jnp.square(h - mu), axis=-1, keepdims=True)
        return (h - mu) * jax.lax.rsqrt(var + LN_EPS) * g + b

    # ---- first layer step for this batch shard: embedding LayerNorm ---------
    @pl.when(layer == 0)
    def _():
        x_scr[...] = layernorm(emb_ref[0], embg_ref[...], embb_ref[...])

    x = x_scr[...]                                    # [L, H] f32, VMEM-resident
    x_bf = x.astype(jnp.bfloat16)

    # ---- self attention (all heads batched in one 3-D einsum) ---------------
    qkv = jnp.dot(x_bf, wqkv_ref[0],
                  preferred_element_type=jnp.float32) + bqkv_ref[0]      # [L, 3H]

    def to_heads(cols):                               # [L, H] f32 -> [NH, L, DH] bf16
        return pltpu.einshape("lnd->nld", cols.reshape(L, NH, DH)).astype(jnp.bfloat16)

    qh = to_heads(qkv[:, 0 * H:1 * H])
    kh = to_heads(qkv[:, 1 * H:2 * H])
    vh = to_heads(qkv[:, 2 * H:3 * H])

    s = jnp.einsum('nqd,nkd->nqk', qh, kh,
                   preferred_element_type=jnp.float32) * SCALE
    s = s + madd_ref[...]                             # (1,1,L) additive mask (hoisted)
    s = s - jnp.max(s, axis=-1, keepdims=True)
    p = jnp.exp(s)
    p = p * pl.reciprocal(jnp.sum(p, axis=-1, keepdims=True), approx=True)
    ctx = jnp.einsum('nqk,nkd->nqd', p.astype(jnp.bfloat16), vh,
                     preferred_element_type=jnp.float32)                 # [NH, L, DH]
    ctx = pltpu.einshape("nld->lnd", ctx).reshape(L, H)                  # [L, H]

    attn = jnp.dot(ctx.astype(jnp.bfloat16), wo_ref[0],
                   preferred_element_type=jnp.float32) + bo_ref[0]
    x = layernorm(attn + x, ln1g_ref[0], ln1b_ref[0])

    # ---- feed forward --------------------------------------------------------
    h1 = jnp.dot(x.astype(jnp.bfloat16), w1_ref[0],
                 preferred_element_type=jnp.float32) + b1_ref[0]
    # TODO(synk): BERT's exact erf-GELU replaced with tanh-approx GELU.
    h1 = jax.nn.gelu(h1, approximate=True)
    h2 = jnp.dot(h1.astype(jnp.bfloat16), w2_ref[0],
                 preferred_element_type=jnp.float32) + b2_ref[0]
    x = layernorm(h2 + x, ln2g_ref[0], ln2b_ref[0])

    # carried state; the store at the last layer would be dead -> gate it off
    @pl.when(layer < last)
    def _():
        x_scr[...] = x

    # ---- last layer step: CNN head (Conv1d + ReLU + MaxPool, cat, fc, sigmoid)
    @pl.when(layer == last)
    def _():
        # TODO(synk): nn.Dropout(0.1) / F.dropout(p=0.1) treated as identity (inference).
        conv_refs = ((wc1_ref, bc1_ref), (wc2_ref, bc2_ref), (wc3_ref, bc3_ref))
        feats = []
        for h, (w_ref, b_ref) in zip(WINDOWS, conv_refs):
            Lh = L - h + 1
            acc = jnp.zeros((L, FILTER), jnp.float32)
            for kk in range(h):
                # tap kk: rows shifted by kk via an XLU roll (one matmul shape
                # for every tap); wrapped rows are masked before the max-pool.
                win = x if kk == 0 else pltpu.roll(x, shift=L - kk, axis=0)
                acc = acc + jnp.dot(win.astype(jnp.bfloat16), w_ref[kk],
                                    preferred_element_type=jnp.float32)
            acc = jnp.maximum(acc + b_ref[...], 0.0)                     # bias + ReLU
            if Lh < L:
                rows = jax.lax.broadcasted_iota(jnp.int32, (L, FILTER), 0)
                acc = jnp.where(rows < Lh, acc, NEG_INF)                 # invalid windows
            feats.append(jnp.max(acc, axis=0, keepdims=True))            # MaxPool1d(Lh)
        cat = jnp.concatenate(feats, axis=-1)                             # [1, 3F]
        # fc [3F -> 1] as elementwise mul + lane reduction (avoids N=1 matmul).
        logits = jnp.sum(cat * wfc_ref[...], axis=-1, keepdims=True) + bfc_ref[...]
        out_ref[...] = jax.nn.sigmoid(logits).reshape(1, 1, 1)


# ----------------------------- wrapper ----------------------------------------
@jax.jit
def bert_cnn_forward(params, input_ids, attention_mask):
    # embedding lookup (gather) stays in JAX glue; everything else is in-kernel.
    emb = (jnp.take(params["word_emb"], input_ids, axis=0)
           + params["pos_emb"][None, :, :]
           + params["type_emb"][0][None, None, :]).astype(jnp.float32)    # (B, L, H)
    # additive attention mask hoisted out of the kernel (computed once, not per layer)
    madd = ((1.0 - attention_mask.astype(jnp.float32)) * -10000.0).reshape(B, 1, L)

    out = pl.pallas_call(
        _bert_cnn_kernel,
        out_shape=jax.ShapeDtypeStruct((B, 1, 1), jnp.float32),
        grid=(B, NLAYERS),                                   # (batch-parallel, layer-carried)
        in_specs=[
            pl.BlockSpec((1, L, H), lambda b, l: (b, 0, 0)),       # embeddings (per shard)
            pl.BlockSpec((1, 1, L), lambda b, l: (b, 0, 0)),       # additive mask
            pl.BlockSpec((1, H), lambda b, l: (0, 0)),             # emb LN gamma
            pl.BlockSpec((1, H), lambda b, l: (0, 0)),             # emb LN beta
            pl.BlockSpec((1, H, 3 * H), lambda b, l: (l, 0, 0)),   # wqkv (per-layer stream)
            pl.BlockSpec((1, 1, 3 * H), lambda b, l: (l, 0, 0)),   # bqkv
            pl.BlockSpec((1, H, H), lambda b, l: (l, 0, 0)),       # wo
            pl.BlockSpec((1, 1, H), lambda b, l: (l, 0, 0)),       # bo
            pl.BlockSpec((1, 1, H), lambda b, l: (l, 0, 0)),       # ln1 gamma
            pl.BlockSpec((1, 1, H), lambda b, l: (l, 0, 0)),       # ln1 beta
            pl.BlockSpec((1, H, I), lambda b, l: (l, 0, 0)),       # w1
            pl.BlockSpec((1, 1, I), lambda b, l: (l, 0, 0)),       # b1
            pl.BlockSpec((1, I, H), lambda b, l: (l, 0, 0)),       # w2
            pl.BlockSpec((1, 1, H), lambda b, l: (l, 0, 0)),       # b2
            pl.BlockSpec((1, 1, H), lambda b, l: (l, 0, 0)),       # ln2 gamma
            pl.BlockSpec((1, 1, H), lambda b, l: (l, 0, 0)),       # ln2 beta
            pl.BlockSpec((1, H, FILTER), lambda b, l: (0, 0, 0)),  # conv w (h=1, resident)
            pl.BlockSpec((1, FILTER), lambda b, l: (0, 0)),        # conv b (h=1)
            pl.BlockSpec((2, H, FILTER), lambda b, l: (0, 0, 0)),  # conv w (h=2)
            pl.BlockSpec((1, FILTER), lambda b, l: (0, 0)),        # conv b (h=2)
            pl.BlockSpec((3, H, FILTER), lambda b, l: (0, 0, 0)),  # conv w (h=3)
            pl.BlockSpec((1, FILTER), lambda b, l: (0, 0)),        # conv b (h=3)
            pl.BlockSpec((1, 3 * FILTER), lambda b, l: (0, 0)),    # fc weight (as [1, 3F])
            pl.BlockSpec((1, 1), lambda b, l: (0, 0)),             # fc bias
        ],
        out_specs=pl.BlockSpec((1, 1, 1), lambda b, l: (b, 0, 0)),
        scratch_shapes=[pltpu.VMEM((L, H), jnp.float32)],       # per-core carried activation
        compiler_params=pltpu.CompilerParams(
            dimension_semantics=("parallel", "arbitrary"),       # batch // layer (carried)
            vmem_limit_bytes=32 * 1024 * 1024),                  # explicit; re-size at H=768
    )(emb, madd,
      params["emb_ln_g"], params["emb_ln_b"],
      params["wqkv"], params["bqkv"], params["wo"], params["bo"],
      params["ln1_g"], params["ln1_b"], params["w1"], params["b1"],
      params["w2"], params["b2"], params["ln2_g"], params["ln2_b"],
      params["wc1"], params["bc1"], params["wc2"], params["bc2"],
      params["wc3"], params["bc3"], params["wfc"], params["bfc"])
    return out[:, 0, 0]  # .squeeze(1) -> [B]


# ----------------------------- params ----------------------------------------
def init_params(key):
    keys = iter(jax.random.split(key, 64))

    def nrm(shape, scale=0.02):
        return scale * jax.random.normal(next(keys), shape, jnp.float32)

    def nrm_bf16(shape, scale=0.02):
        # TODO(synk): at full size store these fp8 (v7x) / int8 (v5e,v6e) to halve weight DMA.
        return nrm(shape, scale).astype(jnp.bfloat16)

    params = {
        "word_emb": nrm((VOCAB, H)),
        "pos_emb": nrm((L, H)),
        "type_emb": nrm((2, H)),
        "emb_ln_g": jnp.ones((1, H), jnp.float32),
        "emb_ln_b": jnp.zeros((1, H), jnp.float32),
        # per-layer weights stacked along a leading NLAYERS axis (Q|K|V fused)
        "wqkv": nrm_bf16((NLAYERS, H, 3 * H)),
        "bqkv": jnp.zeros((NLAYERS, 1, 3 * H), jnp.float32),
        "wo": nrm_bf16((NLAYERS, H, H)),
        "bo": jnp.zeros((NLAYERS, 1, H), jnp.float32),
        "ln1_g": jnp.ones((NLAYERS, 1, H), jnp.float32),
        "ln1_b": jnp.zeros((NLAYERS, 1, H), jnp.float32),
        "w1": nrm_bf16((NLAYERS, H, I)),
        "b1": jnp.zeros((NLAYERS, 1, I), jnp.float32),
        "w2": nrm_bf16((NLAYERS, I, H)),
        "b2": jnp.zeros((NLAYERS, 1, H), jnp.float32),
        "ln2_g": jnp.ones((NLAYERS, 1, H), jnp.float32),
        "ln2_b": jnp.zeros((NLAYERS, 1, H), jnp.float32),
        # Conv1d weights stored as [h, H, F] (== torch weight [F, H, h].permute(2, 1, 0))
        "wc1": nrm_bf16((1, H, FILTER)),
        "bc1": jnp.zeros((1, FILTER), jnp.float32),
        "wc2": nrm_bf16((2, H, FILTER)),
        "bc2": jnp.zeros((1, FILTER), jnp.float32),
        "wc3": nrm_bf16((3, H, FILTER)),
        "bc3": jnp.zeros((1, FILTER), jnp.float32),
        # fc [3F -> 1] stored as [1, 3F] (used as mul + lane-reduce in kernel)
        "wfc": nrm((1, len(WINDOWS) * FILTER)),
        "bfc": jnp.zeros((1, 1), jnp.float32),
    }
    # NOTE: self.dense_1 and self.sen_char_encoder exist in __init__ but are
    # unused in forward -> omitted.
    return params


# ----------------------------- main -------------------------------------------
if __name__ == "__main__":
    key = jax.random.PRNGKey(0)
    pkey, ikey = jax.random.split(key)
    params = init_params(pkey)
    input_ids = jax.random.randint(ikey, (B, L), 0, VOCAB, dtype=jnp.int32)
    attention_mask = jnp.ones((B, L), jnp.int32)

    out = bert_cnn_forward(params, input_ids, attention_mask)
    out = jax.block_until_ready(out)
    assert out.shape == (B,) and out.dtype == jnp.float32
    assert bool(jnp.all(jnp.isfinite(out)))
    assert bool(jnp.all((out >= 0.0) & (out <= 1.0)))
    print("KERNEL_OK")
</pallas_src>

<mosaic_0001>
module attributes {stable_mosaic.version = 11 : i64} {
  func.func @_bert_cnn_kernel(%arg0: i32, %arg1: i32, %arg2: memref<1x8x32xf32, #tpu.memory_space<vmem>>, %arg3: memref<1x1x8xf32, #tpu.memory_space<vmem>>, %arg4: memref<1x32xf32, #tpu.memory_space<vmem>>, %arg5: memref<1x32xf32, #tpu.memory_space<vmem>>, %arg6: memref<1x32x96xbf16, #tpu.memory_space<vmem>>, %arg7: memref<1x1x96xf32, #tpu.memory_space<vmem>>, %arg8: memref<1x32x32xbf16, #tpu.memory_space<vmem>>, %arg9: memref<1x1x32xf32, #tpu.memory_space<vmem>>, %arg10: memref<1x1x32xf32, #tpu.memory_space<vmem>>, %arg11: memref<1x1x32xf32, #tpu.memory_space<vmem>>, %arg12: memref<1x32x64xbf16, #tpu.memory_space<vmem>>, %arg13: memref<1x1x64xf32, #tpu.memory_space<vmem>>, %arg14: memref<1x64x32xbf16, #tpu.memory_space<vmem>>, %arg15: memref<1x1x32xf32, #tpu.memory_space<vmem>>, %arg16: memref<1x1x32xf32, #tpu.memory_space<vmem>>, %arg17: memref<1x1x32xf32, #tpu.memory_space<vmem>>, %arg18: memref<1x32x8xbf16, #tpu.memory_space<vmem>>, %arg19: memref<1x8xf32, #tpu.memory_space<vmem>>, %arg20: memref<2x32x8xbf16, #tpu.memory_space<vmem>>, %arg21: memref<1x8xf32, #tpu.memory_space<vmem>>, %arg22: memref<3x32x8xbf16, #tpu.memory_space<vmem>>, %arg23: memref<1x8xf32, #tpu.memory_space<vmem>>, %arg24: memref<1x24xf32, #tpu.memory_space<vmem>>, %arg25: memref<1x1xf32, #tpu.memory_space<vmem>>, %arg26: memref<1x1x1xf32, #tpu.memory_space<vmem>>, %arg27: memref<8x32xf32, #tpu.memory_space<vmem>>) attributes {dimension_semantics = [#tpu.dimension_semantics<parallel>, #tpu.dimension_semantics<arbitrary>], iteration_bounds = array<i64: 2, 2>, scalar_prefetch = 0 : i64, scratch_operands = 1 : i64, tpu.core_type = #tpu.core_type<tc>, window_params = [{transform_indices = @transform_0, window_bounds = array<i64: 1, 8, 32>}, {transform_indices = @transform_1, window_bounds = array<i64: 1, 1, 8>}, {pipeline_mode = #tpu.pipeline_mode<synchronous>, transform_indices = @transform_2, window_bounds = array<i64: 1, 32>}, {pipeline_mode = #tpu.pipeline_mode<synchronous>, transform_indices = @transform_3, window_bounds = array<i64: 1, 32>}, {transform_indices = @transform_4, window_bounds = array<i64: 1, 32, 96>}, {transform_indices = @transform_5, window_bounds = array<i64: 1, 1, 96>}, {transform_indices = @transform_6, window_bounds = array<i64: 1, 32, 32>}, {transform_indices = @transform_7, window_bounds = array<i64: 1, 1, 32>}, {transform_indices = @transform_8, window_bounds = array<i64: 1, 1, 32>}, {transform_indices = @transform_9, window_bounds = array<i64: 1, 1, 32>}, {transform_indices = @transform_10, window_bounds = array<i64: 1, 32, 64>}, {transform_indices = @transform_11, window_bounds = array<i64: 1, 1, 64>}, {transform_indices = @transform_12, window_bounds = array<i64: 1, 64, 32>}, {transform_indices = @transform_13, window_bounds = array<i64: 1, 1, 32>}, {transform_indices = @transform_14, window_bounds = array<i64: 1, 1, 32>}, {transform_indices = @transform_15, window_bounds = array<i64: 1, 1, 32>}, {pipeline_mode = #tpu.pipeline_mode<synchronous>, transform_indices = @transform_16, window_bounds = array<i64: 1, 32, 8>}, {pipeline_mode = #tpu.pipeline_mode<synchronous>, transform_indices = @transform_17, window_bounds = array<i64: 1, 8>}, {pipeline_mode = #tpu.pipeline_mode<synchronous>, transform_indices = @transform_18, window_bounds = array<i64: 2, 32, 8>}, {pipeline_mode = #tpu.pipeline_mode<synchronous>, transform_indices = @transform_19, window_bounds = array<i64: 1, 8>}, {pipeline_mode = #tpu.pipeline_mode<synchronous>, transform_indices = @transform_20, window_bounds = array<i64: 3, 32, 8>}, {pipeline_mode = #tpu.pipeline_mode<synchronous>, transform_indices = @transform_21, window_bounds = array<i64: 1, 8>}, {pipeline_mode = #tpu.pipeline_mode<synchronous>, transform_indices = @transform_22, window_bounds = array<i64: 1, 24>}, {pipeline_mode = #tpu.pipeline_mode<synchronous>, transform_indices = @transform_23, window_bounds = array<i64: 1, 1>}, {transform_indices = @transform_24, window_bounds = array<i64: 1, 1, 1>}]} {
    %c0_i32 = arith.constant 0 : i32
    %0 = arith.cmpi eq, %arg1, %c0_i32 : i32
    %1 = arith.extui %0 : i1 to i32
    %c0_i32_0 = arith.constant 0 : i32
    %2 = arith.cmpi ne, %1, %c0_i32_0 : i32
    scf.if %2 {
      %c0_66 = arith.constant 0 : index
      %c0_67 = arith.constant 0 : index
      %c0_68 = arith.constant 0 : index
      %141 = vector.load %arg2[%c0_66, %c0_67, %c0_68] : memref<1x8x32xf32, #tpu.memory_space<vmem>>, vector<1x8x32xf32>
      %142 = vector.shape_cast %141 : vector<1x8x32xf32> to vector<8x32xf32>
      %c0_69 = arith.constant 0 : index
      %c0_70 = arith.constant 0 : index
      %143 = vector.load %arg4[%c0_69, %c0_70] : memref<1x32xf32, #tpu.memory_space<vmem>>, vector<1x32xf32>
      %c0_71 = arith.constant 0 : index
      %c0_72 = arith.constant 0 : index
      %144 = vector.load %arg5[%c0_71, %c0_72] : memref<1x32xf32, #tpu.memory_space<vmem>>, vector<1x32xf32>
      %cst_73 = arith.constant dense<0.000000e+00> : vector<8xf32>
      %145 = vector.multi_reduction <add>, %142, %cst_73 [1] : vector<8x32xf32> to vector<8xf32>
      %146 = vector.shape_cast %145 : vector<8xf32> to vector<8x1xf32>
      %cst_74 = arith.constant 3.200000e+01 : f32
      %147 = vector.broadcast %cst_74 : f32 to vector<8x1xf32>
      %148 = arith.divf %146, %147 : vector<8x1xf32>
      %149 = vector.broadcast %148 : vector<8x1xf32> to vector<8x32xf32>
      %150 = arith.subf %142, %149 : vector<8x32xf32>
      %151 = arith.mulf %150, %150 : vector<8x32xf32>
      %cst_75 = arith.constant dense<0.000000e+00> : vector<8xf32>
      %152 = vector.multi_reduction <add>, %151, %cst_75 [1] : vector<8x32xf32> to vector<8xf32>
      %153 = vector.shape_cast %152 : vector<8xf32> to vector<8x1xf32>
      %cst_76 = arith.constant 3.200000e+01 : f32
      %154 = vector.broadcast %cst_76 : f32 to vector<8x1xf32>
      %155 = arith.divf %153, %154 : vector<8x1xf32>
      %156 = vector.broadcast %148 : vector<8x1xf32> to vector<8x32xf32>
      %157 = arith.subf %142, %156 : vector<8x32xf32>
      %cst_77 = arith.constant 9.99999996E-13 : f32
      %158 = vector.broadcast %cst_77 : f32 to vector<8x1xf32>
      %159 = arith.addf %155, %158 : vector<8x1xf32>
      %160 = math.rsqrt %159 : vector<8x1xf32>
      %161 = vector.broadcast %160 : vector<8x1xf32> to vector<8x32xf32>
      %162 = arith.mulf %157, %161 : vector<8x32xf32>
      %163 = vector.broadcast %143 : vector<1x32xf32> to vector<8x32xf32>
      %164 = arith.mulf %162, %163 : vector<8x32xf32>
      %165 = vector.broadcast %144 : vector<1x32xf32> to vector<8x32xf32>
      %166 = arith.addf %164, %165 : vector<8x32xf32>
      %c0_78 = arith.constant 0 : index
      %c0_79 = arith.constant 0 : index
      %167 = vector.load %arg27[%c0_78, %c0_79] : memref<8x32xf32, #tpu.memory_space<vmem>>, vector<8x32xf32>
      tpu.vector_store %arg27[%c0_78, %c0_79], %166 {strides = array<i32>} : memref<8x32xf32, #tpu.memory_space<vmem>>, vector<8x32xf32>,
    } else {
    }
    %c0 = arith.constant 0 : index
    %c0_1 = arith.constant 0 : index
    %3 = vector.load %arg27[%c0, %c0_1] : memref<8x32xf32, #tpu.memory_space<vmem>>, vector<8x32xf32>
    %4 = arith.truncf %3 : vector<8x32xf32> to vector<8x32xbf16>
    %c0_2 = arith.constant 0 : index
    %c0_3 = arith.constant 0 : index
    %c0_4 = arith.constant 0 : index
    %5 = vector.load %arg6[%c0_2, %c0_3, %c0_4] : memref<1x32x96xbf16, #tpu.memory_space<vmem>>, vector<1x32x96xbf16>
    %6 = vector.shape_cast %5 : vector<1x32x96xbf16> to vector<32x96xbf16>
    %cst = arith.constant dense<0.000000e+00> : vector<8x96xf32>
    %7 = tpu.matmul %4, %6, %cst {dimension_numbers = #tpu.dot_dimension_numbers<[1], [0], [0], [1], [0, 0, 1, 1], [], []>} : vector<8x32xbf16>, vector<32x96xbf16>, vector<8x96xf32> -> vector<8x96xf32>
    %c0_5 = arith.constant 0 : index
    %c0_6 = arith.constant 0 : index
    %c0_7 = arith.constant 0 : index
    %8 = vector.load %arg7[%c0_5, %c0_6, %c0_7] : memref<1x1x96xf32, #tpu.memory_space<vmem>>, vector<1x1x96xf32>
    %9 = vector.shape_cast %8 : vector<1x1x96xf32> to vector<1x96xf32>
    %10 = vector.broadcast %9 : vector<1x96xf32> to vector<8x96xf32>
    %11 = arith.addf %7, %10 : vector<8x96xf32>
    %12 = vector.extract_strided_slice %11 {offsets = [0, 0], sizes = [8, 32], strides = [1, 1]} : vector<8x96xf32> to vector<8x32xf32>
    %13 = vector.shape_cast %12 : vector<8x32xf32> to vector<8x2x16xf32>
    %14 = tpu.transpose %13, [1, 0, 2] : vector<8x2x16xf32> -> vector<2x8x16xf32>
    %15 = arith.truncf %14 : vector<2x8x16xf32> to vector<2x8x16xbf16>
    %16 = vector.extract_strided_slice %11 {offsets = [0, 32], sizes = [8, 32], strides = [1, 1]} : vector<8x96xf32> to vector<8x32xf32>
    %17 = vector.shape_cast %16 : vector<8x32xf32> to vector<8x2x16xf32>
    %18 = tpu.transpose %17, [1, 0, 2] : vector<8x2x16xf32> -> vector<2x8x16xf32>
    %19 = arith.truncf %18 : vector<2x8x16xf32> to vector<2x8x16xbf16>
    %20 = vector.extract_strided_slice %11 {offsets = [0, 64], sizes = [8, 32], strides = [1, 1]} : vector<8x96xf32> to vector<8x32xf32>
    %21 = vector.shape_cast %20 : vector<8x32xf32> to vector<8x2x16xf32>
    %22 = tpu.transpose %21, [1, 0, 2] : vector<8x2x16xf32> -> vector<2x8x16xf32>
    %23 = arith.truncf %22 : vector<2x8x16xf32> to vector<2x8x16xbf16>
    "tpu.trace_start"() <{level = 10 : i32, message = "nqd,nkd->nqk"}> : () -> ()
    %cst_8 = arith.constant dense<0.000000e+00> : vector<2x8x8xf32>
    %24 = tpu.matmul %15, %19, %cst_8 {dimension_numbers = #tpu.dot_dimension_numbers<[2], [2], [1], [1], [0, 0, 0, 1, 1, 1], [0], [0]>} : vector<2x8x16xbf16>, vector<2x8x16xbf16>, vector<2x8x8xf32> -> vector<2x8x8xf32>
    "tpu.trace_stop"() : () -> ()
    %cst_9 = arith.constant 2.500000e-01 : f32
    %25 = vector.broadcast %cst_9 : f32 to vector<2x8x8xf32>
    %26 = arith.mulf %24, %25 : vector<2x8x8xf32>
    %c0_10 = arith.constant 0 : index
    %c0_11 = arith.constant 0 : index
    %c0_12 = arith.constant 0 : index
    %27 = vector.load %arg3[%c0_10, %c0_11, %c0_12] : memref<1x1x8xf32, #tpu.memory_space<vmem>>, vector<1x1x8xf32>
    %28 = vector.broadcast %27 : vector<1x1x8xf32> to vector<2x8x8xf32>
    %29 = arith.addf %26, %28 : vector<2x8x8xf32>
    %cst_13 = arith.constant dense<0xFF800000> : vector<2x8xf32>
    %30 = vector.multi_reduction <maximumf>, %29, %cst_13 [2] : vector<2x8x8xf32> to vector<2x8xf32>
    %31 = vector.shape_cast %30 : vector<2x8xf32> to vector<2x8x1xf32>
    %32 = vector.broadcast %31 : vector<2x8x1xf32> to vector<2x8x8xf32>
    %33 = arith.subf %29, %32 : vector<2x8x8xf32>
    %34 = math.exp %33 : vector<2x8x8xf32>
    %cst_14 = arith.constant dense<0.000000e+00> : vector<2x8xf32>
    %35 = vector.multi_reduction <add>, %34, %cst_14 [2] : vector<2x8x8xf32> to vector<2x8xf32>
    %36 = vector.shape_cast %35 : vector<2x8xf32> to vector<2x8x1xf32>
    %37 = tpu.reciprocal %36 {approx = true} : vector<2x8x1xf32> -> vector<2x8x1xf32>
    %38 = vector.broadcast %37 : vector<2x8x1xf32> to vector<2x8x8xf32>
    %39 = arith.mulf %34, %38 : vector<2x8x8xf32>
    %40 = arith.truncf %39 : vector<2x8x8xf32> to vector<2x8x8xbf16>
    "tpu.trace_start"() <{level = 10 : i32, message = "nqk,nkd->nqd"}> : () -> ()
    %cst_15 = arith.constant dense<0.000000e+00> : vector<2x8x16xf32>
    %41 = tpu.matmul %40, %23, %cst_15 {dimension_numbers = #tpu.dot_dimension_numbers<[2], [1], [1], [2], [0, 0, 0, 1, 1, 2], [0], [0]>} : vector<2x8x8xbf16>, vector<2x8x16xbf16>, vector<2x8x16xf32> -> vector<2x8x16xf32>
    "tpu.trace_stop"() : () -> ()
    %42 = tpu.transpose %41, [1, 0, 2] : vector<2x8x16xf32> -> vector<8x2x16xf32>
    %43 = vector.shape_cast %42 : vector<8x2x16xf32> to vector<8x32xf32>
    %44 = arith.truncf %43 : vector<8x32xf32> to vector<8x32xbf16>
    %c0_16 = arith.constant 0 : index
    %c0_17 = arith.constant 0 : index
    %c0_18 = arith.constant 0 : index
    %45 = vector.load %arg8[%c0_16, %c0_17, %c0_18] : memref<1x32x32xbf16, #tpu.memory_space<vmem>>, vector<1x32x32xbf16>
    %46 = vector.shape_cast %45 : vector<1x32x32xbf16> to vector<32x32xbf16>
    %cst_19 = arith.constant dense<0.000000e+00> : vector<8x32xf32>
    %47 = tpu.matmul %44, %46, %cst_19 {dimension_numbers = #tpu.dot_dimension_numbers<[1], [0], [0], [1], [0, 0, 1, 1], [], []>} : vector<8x32xbf16>, vector<32x32xbf16>, vector<8x32xf32> -> vector<8x32xf32>
    %c0_20 = arith.constant 0 : index
    %c0_21 = arith.constant 0 : index
    %c0_22 = arith.constant 0 : index
    %48 = vector.load %arg9[%c0_20, %c0_21, %c0_22] : memref<1x1x32xf32, #tpu.memory_space<vmem>>, vector<1x1x32xf32>
    %49 = vector.shape_cast %48 : vector<1x1x32xf32> to vector<1x32xf32>
    %50 = vector.broadcast %49 : vector<1x32xf32> to vector<8x32xf32>
    %51 = arith.addf %47, %50 : vector<8x32xf32>
    %52 = arith.addf %51, %3 : vector<8x32xf32>
    %c0_23 = arith.constant 0 : index
    %c0_24 = arith.constant 0 : index
    %c0_25 = arith.constant 0 : index
    %53 = vector.load %arg10[%c0_23, %c0_24, %c0_25] : memref<1x1x32xf32, #tpu.memory_space<vmem>>, vector<1x1x32xf32>
    %54 = vector.shape_cast %53 : vector<1x1x32xf32> to vector<1x32xf32>
    %c0_26 = arith.constant 0 : index
    %c0_27 = arith.constant 0 : index
    %c0_28 = arith.constant 0 : index
    %55 = vector.load %arg11[%c0_26, %c0_27, %c0_28] : memref<1x1x32xf32, #tpu.memory_space<vmem>>, vector<1x1x32xf32>
    %56 = vector.shape_cast %55 : vector<1x1x32xf32> to vector<1x32xf32>
    %cst_29 = arith.constant dense<0.000000e+00> : vector<8xf32>
    %57 = vector.multi_reduction <add>, %52, %cst_29 [1] : vector<8x32xf32> to vector<8xf32>
    %58 = vector.shape_cast %57 : vector<8xf32> to vector<8x1xf32>
    %cst_30 = arith.constant 3.200000e+01 : f32
    %59 = vector.broadcast %cst_30 : f32 to vector<8x1xf32>
    %60 = arith.divf %58, %59 : vector<8x1xf32>
    %61 = vector.broadcast %60 : vector<8x1xf32> to vector<8x32xf32>
    %62 = arith.subf %52, %61 : vector<8x32xf32>
    %63 = arith.mulf %62, %62 : vector<8x32xf32>
    %cst_31 = arith.constant dense<0.000000e+00> : vector<8xf32>
    %64 = vector.multi_reduction <add>, %63, %cst_31 [1] : vector<8x32xf32> to vector<8xf32>
    %65 = vector.shape_cast %64 : vector<8xf32> to vector<8x1xf32>
    %cst_32 = arith.constant 3.200000e+01 : f32
    %66 = vector.broadcast %cst_32 : f32 to vector<8x1xf32>
    %67 = arith.divf %65, %66 : vector<8x1xf32>
    %68 = vector.broadcast %60 : vector<8x1xf32> to vector<8x32xf32>
    %69 = arith.subf %52, %68 : vector<8x32xf32>
    %cst_33 = arith.constant 9.99999996E-13 : f32
    %70 = vector.broadcast %cst_33 : f32 to vector<8x1xf32>
    %71 = arith.addf %67, %70 : vector<8x1xf32>
    %72 = math.rsqrt %71 : vector<8x1xf32>
    %73 = vector.broadcast %72 : vector<8x1xf32> to vector<8x32xf32>
    %74 = arith.mulf %69, %73 : vector<8x32xf32>
    %75 = vector.broadcast %54 : vector<1x32xf32> to vector<8x32xf32>
    %76 = arith.mulf %74, %75 : vector<8x32xf32>
    %77 = vector.broadcast %56 : vector<1x32xf32> to vector<8x32xf32>
    %78 = arith.addf %76, %77 : vector<8x32xf32>
    %79 = arith.truncf %78 : vector<8x32xf32> to vector<8x32xbf16>
    %c0_34 = arith.constant 0 : index
    %c0_35 = arith.constant 0 : index
    %c0_36 = arith.constant 0 : index
    %80 = vector.load %arg12[%c0_34, %c0_35, %c0_36] : memref<1x32x64xbf16, #tpu.memory_space<vmem>>, vector<1x32x64xbf16>
    %81 = vector.shape_cast %80 : vector<1x32x64xbf16> to vector<32x64xbf16>
    %cst_37 = arith.constant dense<0.000000e+00> : vector<8x64xf32>
    %82 = tpu.matmul %79, %81, %cst_37 {dimension_numbers = #tpu.dot_dimension_numbers<[1], [0], [0], [1], [0, 0, 1, 1], [], []>} : vector<8x32xbf16>, vector<32x64xbf16>, vector<8x64xf32> -> vector<8x64xf32>
    %c0_38 = arith.constant 0 : index
    %c0_39 = arith.constant 0 : index
    %c0_40 = arith.constant 0 : index
    %83 = vector.load %arg13[%c0_38, %c0_39, %c0_40] : memref<1x1x64xf32, #tpu.memory_space<vmem>>, vector<1x1x64xf32>
    %84 = vector.shape_cast %83 : vector<1x1x64xf32> to vector<1x64xf32>
    %85 = vector.broadcast %84 : vector<1x64xf32> to vector<8x64xf32>
    %86 = arith.addf %82, %85 : vector<8x64xf32>
    %87 = arith.mulf %86, %86 : vector<8x64xf32>
    %88 = arith.mulf %86, %87 : vector<8x64xf32>
    %cst_41 = arith.constant 4.471500e-02 : f32
    %89 = vector.broadcast %cst_41 : f32 to vector<8x64xf32>
    %90 = arith.mulf %89, %88 : vector<8x64xf32>
    %91 = arith.addf %86, %90 : vector<8x64xf32>
    %cst_42 = arith.constant 0.797884583 : f32
    %92 = vector.broadcast %cst_42 : f32 to vector<8x64xf32>
    %93 = arith.mulf %92, %91 : vector<8x64xf32>
    %94 = math.tanh %93 : vector<8x64xf32>
    %cst_43 = arith.constant 1.000000e+00 : f32
    %95 = vector.broadcast %cst_43 : f32 to vector<8x64xf32>
    %96 = arith.addf %95, %94 : vector<8x64xf32>
    %cst_44 = arith.constant 5.000000e-01 : f32
    %97 = vector.broadcast %cst_44 : f32 to vector<8x64xf32>
    %98 = arith.mulf %97, %96 : vector<8x64xf32>
    %99 = arith.mulf %86, %98 : vector<8x64xf32>
    %100 = arith.truncf %99 : vector<8x64xf32> to vector<8x64xbf16>
    %c0_45 = arith.constant 0 : index
    %c0_46 = arith.constant 0 : index
    %c0_47 = arith.constant 0 : index
    %101 = vector.load %arg14[%c0_45, %c0_46, %c0_47] : memref<1x64x32xbf16, #tpu.memory_space<vmem>>, vector<1x64x32xbf16>
    %102 = vector.shape_cast %101 : vector<1x64x32xbf16> to vector<64x32xbf16>
    %cst_48 = arith.constant dense<0.000000e+00> : vector<8x32xf32>
    %103 = tpu.matmul %100, %102, %cst_48 {dimension_numbers = #tpu.dot_dimension_numbers<[1], [0], [0], [1], [0, 0, 1, 1], [], []>} : vector<8x64xbf16>, vector<64x32xbf16>, vector<8x32xf32> -> vector<8x32xf32>
    %c0_49 = arith.constant 0 : index
    %c0_50 = arith.constant 0 : index
    %c0_51 = arith.constant 0 : index
    %104 = vector.load %arg15[%c0_49, %c0_50, %c0_51] : memref<1x1x32xf32, #tpu.memory_space<vmem>>, vector<1x1x32xf32>
    %105 = vector.shape_cast %104 : vector<1x1x32xf32> to vector<1x32xf32>
    %106 = vector.broadcast %105 : vector<1x32xf32> to vector<8x32xf32>
    %107 = arith.addf %103, %106 : vector<8x32xf32>
    %108 = arith.addf %107, %78 : vector<8x32xf32>
    %c0_52 = arith.constant 0 : index
    %c0_53 = arith.constant 0 : index
    %c0_54 = arith.constant 0 : index
    %109 = vector.load %arg16[%c0_52, %c0_53, %c0_54] : memref<1x1x32xf32, #tpu.memory_space<vmem>>, vector<1x1x32xf32>
    %110 = vector.shape_cast %109 : vector<1x1x32xf32> to vector<1x32xf32>
    %c0_55 = arith.constant 0 : index
    %c0_56 = arith.constant 0 : index
    %c0_57 = arith.constant 0 : index
    %111 = vector.load %arg17[%c0_55, %c0_56, %c0_57] : memref<1x1x32xf32, #tpu.memory_space<vmem>>, vector<1x1x32xf32>
    %112 = vector.shape_cast %111 : vector<1x1x32xf32> to vector<1x32xf32>
    %cst_58 = arith.constant dense<0.000000e+00> : vector<8xf32>
    %113 = vector.multi_reduction <add>, %108, %cst_58 [1] : vector<8x32xf32> to vector<8xf32>
    %114 = vector.shape_cast %113 : vector<8xf32> to vector<8x1xf32>
    %cst_59 = arith.constant 3.200000e+01 : f32
    %115 = vector.broadcast %cst_59 : f32 to vector<8x1xf32>
    %116 = arith.divf %114, %115 : vector<8x1xf32>
    %117 = vector.broadcast %116 : vector<8x1xf32> to vector<8x32xf32>
    %118 = arith.subf %108, %117 : vector<8x32xf32>
    %119 = arith.mulf %118, %118 : vector<8x32xf32>
    %cst_60 = arith.constant dense<0.000000e+00> : vector<8xf32>
    %120 = vector.multi_reduction <add>, %119, %cst_60 [1] : vector<8x32xf32> to vector<8xf32>
    %121 = vector.shape_cast %120 : vector<8xf32> to vector<8x1xf32>
    %cst_61 = arith.constant 3.200000e+01 : f32
    %122 = vector.broadcast %cst_61 : f32 to vector<8x1xf32>
    %123 = arith.divf %121, %122 : vector<8x1xf32>
    %124 = vector.broadcast %116 : vector<8x1xf32> to vector<8x32xf32>
    %125 = arith.subf %108, %124 : vector<8x32xf32>
    %cst_62 = arith.constant 9.99999996E-13 : f32
    %126 = vector.broadcast %cst_62 : f32 to vector<8x1xf32>
    %127 = arith.addf %123, %126 : vector<8x1xf32>
    %128 = math.rsqrt %127 : vector<8x1xf32>
    %129 = vector.broadcast %128 : vector<8x1xf32> to vector<8x32xf32>
    %130 = arith.mulf %125, %129 : vector<8x32xf32>
    %131 = vector.broadcast %110 : vector<1x32xf32> to vector<8x32xf32>
    %132 = arith.mulf %130, %131 : vector<8x32xf32>
    %133 = vector.broadcast %112 : vector<1x32xf32> to vector<8x32xf32>
    %134 = arith.addf %132, %133 : vector<8x32xf32>
    %c1_i32 = arith.constant 1 : i32
    %135 = arith.cmpi slt, %arg1, %c1_i32 : i32
    %136 = arith.extui %135 : i1 to i32
    %c0_i32_63 = arith.constant 0 : i32
    %137 = arith.cmpi ne, %136, %c0_i32_63 : i32
    scf.if %137 {
      %c0_66 = arith.constant 0 : index
      %c0_67 = arith.constant 0 : index
      %141 = vector.load %arg27[%c0_66, %c0_67] : memref<8x32xf32, #tpu.memory_space<vmem>>, vector<8x32xf32>
      tpu.vector_store %arg27[%c0_66, %c0_67], %134 {strides = array<i32>} : memref<8x32xf32, #tpu.memory_space<vmem>>, vector<8x32xf32>,
    } else {
    }
    %c1_i32_64 = arith.constant 1 : i32
    %138 = arith.cmpi eq, %arg1, %c1_i32_64 : i32
    %139 = arith.extui %138 : i1 to i32
    %c0_i32_65 = arith.constant 0 : i32
    %140 = arith.cmpi ne, %139, %c0_i32_65 : i32
    scf.if %140 {
      %cst_66 = arith.constant 0.000000e+00 : f32
      %141 = vector.broadcast %cst_66 : f32 to vector<8x8xf32>
      %142 = arith.truncf %134 : vector<8x32xf32> to vector<8x32xbf16>
      %c0_67 = arith.constant 0 : index
      %c0_68 = arith.constant 0 : index
      %c0_69 = arith.constant 0 : index
      %143 = vector.load %arg18[%c0_67, %c0_68, %c0_69] : memref<1x32x8xbf16, #tpu.memory_space<vmem>>, vector<1x32x8xbf16>
      %144 = vector.shape_cast %143 : vector<1x32x8xbf16> to vector<32x8xbf16>
      %cst_70 = arith.constant dense<0.000000e+00> : vector<8x8xf32>
      %145 = tpu.matmul %142, %144, %cst_70 {dimension_numbers = #tpu.dot_dimension_numbers<[1], [0], [0], [1], [0, 0, 1, 1], [], []>} : vector<8x32xbf16>, vector<32x8xbf16>, vector<8x8xf32> -> vector<8x8xf32>
      %146 = arith.addf %141, %145 : vector<8x8xf32>
      %c0_71 = arith.constant 0 : index
      %c0_72 = arith.constant 0 : index
      %147 = vector.load %arg19[%c0_71, %c0_72] : memref<1x8xf32, #tpu.memory_space<vmem>>, vector<1x8xf32>
      %148 = vector.broadcast %147 : vector<1x8xf32> to vector<8x8xf32>
      %149 = arith.addf %146, %148 : vector<8x8xf32>
      %cst_73 = arith.constant 0.000000e+00 : f32
      %150 = vector.broadcast %cst_73 : f32 to vector<8x8xf32>
      %151 = arith.maximumf %149, %150 : vector<8x8xf32>
      %cst_74 = arith.constant dense<0xFF800000> : vector<8xf32>
      %152 = vector.multi_reduction <maximumf>, %151, %cst_74 [0] : vector<8x8xf32> to vector<8xf32>
      %153 = vector.shape_cast %152 : vector<8xf32> to vector<1x8xf32>
      %cst_75 = arith.constant 0.000000e+00 : f32
      %154 = vector.broadcast %cst_75 : f32 to vector<8x8xf32>
      %155 = arith.truncf %134 : vector<8x32xf32> to vector<8x32xbf16>
      %c0_76 = arith.constant 0 : index
      %c0_77 = arith.constant 0 : index
      %c0_78 = arith.constant 0 : index
      %156 = vector.load %arg20[%c0_76, %c0_77, %c0_78] : memref<2x32x8xbf16, #tpu.memory_space<vmem>>, vector<1x32x8xbf16>
      %157 = vector.shape_cast %156 : vector<1x32x8xbf16> to vector<32x8xbf16>
      %cst_79 = arith.constant dense<0.000000e+00> : vector<8x8xf32>
      %158 = tpu.matmul %155, %157, %cst_79 {dimension_numbers = #tpu.dot_dimension_numbers<[1], [0], [0], [1], [0, 0, 1, 1], [], []>} : vector<8x32xbf16>, vector<32x8xbf16>, vector<8x8xf32> -> vector<8x8xf32>
      %159 = arith.addf %154, %158 : vector<8x8xf32>
      %c7_i32 = arith.constant 7 : i32
      %160 = tpu.dynamic_rotate %134 by %c7_i32 dim 0 : vector<8x32xf32>, i32 -> vector<8x32xf32>
      %161 = arith.truncf %160 : vector<8x32xf32> to vector<8x32xbf16>
      %c1 = arith.constant 1 : index
      %c0_80 = arith.constant 0 : index
      %c0_81 = arith.constant 0 : index
      %162 = vector.load %arg20[%c1, %c0_80, %c0_81] : memref<2x32x8xbf16, #tpu.memory_space<vmem>>, vector<1x32x8xbf16>
      %163 = vector.shape_cast %162 : vector<1x32x8xbf16> to vector<32x8xbf16>
      %cst_82 = arith.constant dense<0.000000e+00> : vector<8x8xf32>
      %164 = tpu.matmul %161, %163, %cst_82 {dimension_numbers = #tpu.dot_dimension_numbers<[1], [0], [0], [1], [0, 0, 1, 1], [], []>} : vector<8x32xbf16>, vector<32x8xbf16>, vector<8x8xf32> -> vector<8x8xf32>
      %165 = arith.addf %159, %164 : vector<8x8xf32>
      %c0_83 = arith.constant 0 : index
      %c0_84 = arith.constant 0 : index
      %166 = vector.load %arg21[%c0_83, %c0_84] : memref<1x8xf32, #tpu.memory_space<vmem>>, vector<1x8xf32>
      %167 = vector.broadcast %166 : vector<1x8xf32> to vector<8x8xf32>
      %168 = arith.addf %165, %167 : vector<8x8xf32>
      %cst_85 = arith.constant 0.000000e+00 : f32
      %169 = vector.broadcast %cst_85 : f32 to vector<8x8xf32>
      %170 = arith.maximumf %168, %169 : vector<8x8xf32>
      %171 = tpu.iota {dimensions = array<i32: 0>} : vector<8x8xi32>
      %c7_i32_86 = arith.constant 7 : i32
      %172 = vector.broadcast %c7_i32_86 : i32 to vector<8x8xi32>
      %173 = arith.cmpi slt, %171, %172 : vector<8x8xi32>
      %cst_87 = arith.constant 0xFF800000 : f32
      %174 = vector.broadcast %cst_87 : f32 to vector<8x8xf32>
      %175 = arith.select %173, %170, %174 : vector<8x8xi1>, vector<8x8xf32>
      %cst_88 = arith.constant dense<0xFF800000> : vector<8xf32>
      %176 = vector.multi_reduction <maximumf>, %175, %cst_88 [0] : vector<8x8xf32> to vector<8xf32>
      %177 = vector.shape_cast %176 : vector<8xf32> to vector<1x8xf32>
      %cst_89 = arith.constant 0.000000e+00 : f32
      %178 = vector.broadcast %cst_89 : f32 to vector<8x8xf32>
      %179 = arith.truncf %134 : vector<8x32xf32> to vector<8x32xbf16>
      %c0_90 = arith.constant 0 : index
      %c0_91 = arith.constant 0 : index
      %c0_92 = arith.constant 0 : index
      %180 = vector.load %arg22[%c0_90, %c0_91, %c0_92] : memref<3x32x8xbf16, #tpu.memory_space<vmem>>, vector<1x32x8xbf16>
      %181 = vector.shape_cast %180 : vector<1x32x8xbf16> to vector<32x8xbf16>
      %cst_93 = arith.constant dense<0.000000e+00> : vector<8x8xf32>
      %182 = tpu.matmul %179, %181, %cst_93 {dimension_numbers = #tpu.dot_dimension_numbers<[1], [0], [0], [1], [0, 0, 1, 1], [], []>} : vector<8x32xbf16>, vector<32x8xbf16>, vector<8x8xf32> -> vector<8x8xf32>
      %183 = arith.addf %178, %182 : vector<8x8xf32>
      %c7_i32_94 = arith.constant 7 : i32
      %184 = tpu.dynamic_rotate %134 by %c7_i32_94 dim 0 : vector<8x32xf32>, i32 -> vector<8x32xf32>
      %185 = arith.truncf %184 : vector<8x32xf32> to vector<8x32xbf16>
      %c1_95 = arith.constant 1 : index
      %c0_96 = arith.constant 0 : index
      %c0_97 = arith.constant 0 : index
      %186 = vector.load %arg22[%c1_95, %c0_96, %c0_97] : memref<3x32x8xbf16, #tpu.memory_space<vmem>>, vector<1x32x8xbf16>
      %187 = vector.shape_cast %186 : vector<1x32x8xbf16> to vector<32x8xbf16>
      %cst_98 = arith.constant dense<0.000000e+00> : vector<8x8xf32>
      %188 = tpu.matmul %185, %187, %cst_98 {dimension_numbers = #tpu.dot_dimension_numbers<[1], [0], [0], [1], [0, 0, 1, 1], [], []>} : vector<8x32xbf16>, vector<32x8xbf16>, vector<8x8xf32> -> vector<8x8xf32>
      %189 = arith.addf %183, %188 : vector<8x8xf32>
      %c6_i32 = arith.constant 6 : i32
      %190 = tpu.dynamic_rotate %134 by %c6_i32 dim 0 : vector<8x32xf32>, i32 -> vector<8x32xf32>
      %191 = arith.truncf %190 : vector<8x32xf32> to vector<8x32xbf16>
      %c2 = arith.constant 2 : index
      %c0_99 = arith.constant 0 : index
      %c0_100 = arith.constant 0 : index
      %192 = vector.load %arg22[%c2, %c0_99, %c0_100] : memref<3x32x8xbf16, #tpu.memory_space<vmem>>, vector<1x32x8xbf16>
      %193 = vector.shape_cast %192 : vector<1x32x8xbf16> to vector<32x8xbf16>
      %cst_101 = arith.constant dense<0.000000e+00> : vector<8x8xf32>
      %194 = tpu.matmul %191, %193, %cst_101 {dimension_numbers = #tpu.dot_dimension_numbers<[1], [0], [0], [1], [0, 0, 1, 1], [], []>} : vector<8x32xbf16>, vector<32x8xbf16>, vector<8x8xf32> -> vector<8x8xf32>
      %195 = arith.addf %189, %194 : vector<8x8xf32>
      %c0_102 = arith.constant 0 : index
      %c0_103 = arith.constant 0 : index
      %196 = vector.load %arg23[%c0_102, %c0_103] : memref<1x8xf32, #tpu.memory_space<vmem>>, vector<1x8xf32>
      %197 = vector.broadcast %196 : vector<1x8xf32> to vector<8x8xf32>
      %198 = arith.addf %195, %197 : vector<8x8xf32>
      %cst_104 = arith.constant 0.000000e+00 : f32
      %199 = vector.broadcast %cst_104 : f32 to vector<8x8xf32>
      %200 = arith.maximumf %198, %199 : vector<8x8xf32>
      %201 = tpu.iota {dimensions = array<i32: 0>} : vector<8x8xi32>
      %c6_i32_105 = arith.constant 6 : i32
      %202 = vector.broadcast %c6_i32_105 : i32 to vector<8x8xi32>
      %203 = arith.cmpi slt, %201, %202 : vector<8x8xi32>
      %cst_106 = arith.constant 0xFF800000 : f32
      %204 = vector.broadcast %cst_106 : f32 to vector<8x8xf32>
      %205 = arith.select %203, %200, %204 : vector<8x8xi1>, vector<8x8xf32>
      %cst_107 = arith.constant dense<0xFF800000> : vector<8xf32>
      %206 = vector.multi_reduction <maximumf>, %205, %cst_107 [0] : vector<8x8xf32> to vector<8xf32>
      %207 = vector.shape_cast %206 : vector<8xf32> to vector<1x8xf32>
      %208 = tpu.concatenate %153, %177, %207 in 1 : vector<1x8xf32>, vector<1x8xf32>, vector<1x8xf32> -> vector<1x24xf32>
      %c0_108 = arith.constant 0 : index
      %c0_109 = arith.constant 0 : index
      %209 = vector.load %arg24[%c0_108, %c0_109] : memref<1x24xf32, #tpu.memory_space<vmem>>, vector<1x24xf32>
      %210 = arith.mulf %208, %209 : vector<1x24xf32>
      %cst_110 = arith.constant dense<0.000000e+00> : vector<1xf32>
      %211 = vector.multi_reduction <add>, %210, %cst_110 [1] : vector<1x24xf32> to vector<1xf32>
      %212 = vector.shape_cast %211 : vector<1xf32> to vector<1x1xf32>
      %c0_111 = arith.constant 0 : index
      %c0_112 = arith.constant 0 : index
      %213 = vector.load %arg25[%c0_111, %c0_112] : memref<1x1xf32, #tpu.memory_space<vmem>>, vector<1x1xf32>
      %214 = arith.addf %212, %213 : vector<1x1xf32>
      %215 = arith.negf %214 : vector<1x1xf32>
      %216 = math.exp %215 : vector<1x1xf32>
      %cst_113 = arith.constant 1.000000e+00 : f32
      %217 = vector.broadcast %cst_113 : f32 to vector<1x1xf32>
      %218 = arith.addf %217, %216 : vector<1x1xf32>
      %219 = arith.divf %217, %218 : vector<1x1xf32>
      %220 = vector.shape_cast %219 : vector<1x1xf32> to vector<1x1x1xf32>
      %c0_114 = arith.constant 0 : index
      %c0_115 = arith.constant 0 : index
      %c0_116 = arith.constant 0 : index
      %221 = vector.load %arg26[%c0_114, %c0_115, %c0_116] : memref<1x1x1xf32, #tpu.memory_space<vmem>>, vector<1x1x1xf32>
      tpu.vector_store %arg26[%c0_114, %c0_115, %c0_116], %220 {strides = array<i32>} : memref<1x1x1xf32, #tpu.memory_space<vmem>>, vector<1x1x1xf32>,
    } else {
    }
    return
  }
  func.func @transform_0(%arg0: i32, %arg1: i32) -> (i32, i32, i32) {
    %c0_i32 = arith.constant 0 : i32
    %c0_i32_0 = arith.constant 0 : i32
    %c0_i32_1 = arith.constant 0 : i32
    return %arg0, %c0_i32, %c0_i32_0 : i32, i32, i32
  }
  func.func @transform_1(%arg0: i32, %arg1: i32) -> (i32, i32, i32) {
    %c0_i32 = arith.constant 0 : i32
    %c0_i32_0 = arith.constant 0 : i32
    %c0_i32_1 = arith.constant 0 : i32
    return %arg0, %c0_i32, %c0_i32_0 : i32, i32, i32
  }
  func.func @transform_2(%arg0: i32, %arg1: i32) -> (i32, i32) {
    %c0_i32 = arith.constant 0 : i32
    %c0_i32_0 = arith.constant 0 : i32
    %c0_i32_1 = arith.constant 0 : i32
    return %c0_i32, %c0_i32_0 : i32, i32
  }
  func.func @transform_3(%arg0: i32, %arg1: i32) -> (i32, i32) {
    %c0_i32 = arith.constant 0 : i32
    %c0_i32_0 = arith.constant 0 : i32
    %c0_i32_1 = arith.constant 0 : i32
    return %c0_i32, %c0_i32_0 : i32, i32
  }
  func.func @transform_4(%arg0: i32, %arg1: i32) -> (i32, i32, i32) {
    %c0_i32 = arith.constant 0 : i32
    %c0_i32_0 = arith.constant 0 : i32
    %c0_i32_1 = arith.constant 0 : i32
    return %arg1, %c0_i32, %c0_i32_0 : i32, i32, i32
  }
  func.func @transform_5(%arg0: i32, %arg1: i32) -> (i32, i32, i32) {
    %c0_i32 = arith.constant 0 : i32
    %c0_i32_0 = arith.constant 0 : i32
    %c0_i32_1 = arith.constant 0 : i32
    return %arg1, %c0_i32, %c0_i32_0 : i32, i32, i32
  }
  func.func @transform_6(%arg0: i32, %arg1: i32) -> (i32, i32, i32) {
    %c0_i32 = arith.constant 0 : i32
    %c0_i32_0 = arith.constant 0 : i32
    %c0_i32_1 = arith.constant 0 : i32
    return %arg1, %c0_i32, %c0_i32_0 : i32, i32, i32
  }
  func.func @transform_7(%arg0: i32, %arg1: i32) -> (i32, i32, i32) {
    %c0_i32 = arith.constant 0 : i32
    %c0_i32_0 = arith.constant 0 : i32
    %c0_i32_1 = arith.constant 0 : i32
    return %arg1, %c0_i32, %c0_i32_0 : i32, i32, i32
  }
  func.func @transform_8(%arg0: i32, %arg1: i32) -> (i32, i32, i32) {
    %c0_i32 = arith.constant 0 : i32
    %c0_i32_0 = arith.constant 0 : i32
    %c0_i32_1 = arith.constant 0 : i32
    return %arg1, %c0_i32, %c0_i32_0 : i32, i32, i32
  }
  func.func @transform_9(%arg0: i32, %arg1: i32) -> (i32, i32, i32) {
    %c0_i32 = arith.constant 0 : i32
    %c0_i32_0 = arith.constant 0 : i32
    %c0_i32_1 = arith.constant 0 : i32
    return %arg1, %c0_i32, %c0_i32_0 : i32, i32, i32
  }
  func.func @transform_10(%arg0: i32, %arg1: i32) -> (i32, i32, i32) {
    %c0_i32 = arith.constant 0 : i32
    %c0_i32_0 = arith.constant 0 : i32
    %c0_i32_1 = arith.constant 0 : i32
    return %arg1, %c0_i32, %c0_i32_0 : i32, i32, i32
  }
  func.func @transform_11(%arg0: i32, %arg1: i32) -> (i32, i32, i32) {
    %c0_i32 = arith.constant 0 : i32
    %c0_i32_0 = arith.constant 0 : i32
    %c0_i32_1 = arith.constant 0 : i32
    return %arg1, %c0_i32, %c0_i32_0 : i32, i32, i32
  }
  func.func @transform_12(%arg0: i32, %arg1: i32) -> (i32, i32, i32) {
    %c0_i32 = arith.constant 0 : i32
    %c0_i32_0 = arith.constant 0 : i32
    %c0_i32_1 = arith.constant 0 : i32
    return %arg1, %c0_i32, %c0_i32_0 : i32, i32, i32
  }
  func.func @transform_13(%arg0: i32, %arg1: i32) -> (i32, i32, i32) {
    %c0_i32 = arith.constant 0 : i32
    %c0_i32_0 = arith.constant 0 : i32
    %c0_i32_1 = arith.constant 0 : i32
    return %arg1, %c0_i32, %c0_i32_0 : i32, i32, i32
  }
  func.func @transform_14(%arg0: i32, %arg1: i32) -> (i32, i32, i32) {
    %c0_i32 = arith.constant 0 : i32
    %c0_i32_0 = arith.constant 0 : i32
    %c0_i32_1 = arith.constant 0 : i32
    return %arg1, %c0_i32, %c0_i32_0 : i32, i32, i32
  }
  func.func @transform_15(%arg0: i32, %arg1: i32) -> (i32, i32, i32) {
    %c0_i32 = arith.constant 0 : i32
    %c0_i32_0 = arith.constant 0 : i32
    %c0_i32_1 = arith.constant 0 : i32
    return %arg1, %c0_i32, %c0_i32_0 : i32, i32, i32
  }
  func.func @transform_16(%arg0: i32, %arg1: i32) -> (i32, i32, i32) {
    %c0_i32 = arith.constant 0 : i32
    %c0_i32_0 = arith.constant 0 : i32
    %c0_i32_1 = arith.constant 0 : i32
    %c0_i32_2 = arith.constant 0 : i32
    return %c0_i32, %c0_i32_0, %c0_i32_1 : i32, i32, i32
  }
  func.func @transform_17(%arg0: i32, %arg1: i32) -> (i32, i32) {
    %c0_i32 = arith.constant 0 : i32
    %c0_i32_0 = arith.constant 0 : i32
    %c0_i32_1 = arith.constant 0 : i32
    return %c0_i32, %c0_i32_0 : i32, i32
  }
  func.func @transform_18(%arg0: i32, %arg1: i32) -> (i32, i32, i32) {
    %c0_i32 = arith.constant 0 : i32
    %c0_i32_0 = arith.constant 0 : i32
    %c0_i32_1 = arith.constant 0 : i32
    %c0_i32_2 = arith.constant 0 : i32
    return %c0_i32, %c0_i32_0, %c0_i32_1 : i32, i32, i32
  }
  func.func @transform_19(%arg0: i32, %arg1: i32) -> (i32, i32) {
    %c0_i32 = arith.constant 0 : i32
    %c0_i32_0 = arith.constant 0 : i32
    %c0_i32_1 = arith.constant 0 : i32
    return %c0_i32, %c0_i32_0 : i32, i32
  }
  func.func @transform_20(%arg0: i32, %arg1: i32) -> (i32, i32, i32) {
    %c0_i32 = arith.constant 0 : i32
    %c0_i32_0 = arith.constant 0 : i32
    %c0_i32_1 = arith.constant 0 : i32
    %c0_i32_2 = arith.constant 0 : i32
    return %c0_i32, %c0_i32_0, %c0_i32_1 : i32, i32, i32
  }
  func.func @transform_21(%arg0: i32, %arg1: i32) -> (i32, i32) {
    %c0_i32 = arith.constant 0 : i32
    %c0_i32_0 = arith.constant 0 : i32
    %c0_i32_1 = arith.constant 0 : i32
    return %c0_i32, %c0_i32_0 : i32, i32
  }
  func.func @transform_22(%arg0: i32, %arg1: i32) -> (i32, i32) {
    %c0_i32 = arith.constant 0 : i32
    %c0_i32_0 = arith.constant 0 : i32
    %c0_i32_1 = arith.constant 0 : i32
    return %c0_i32, %c0_i32_0 : i32, i32
  }
  func.func @transform_23(%arg0: i32, %arg1: i32) -> (i32, i32) {
    %c0_i32 = arith.constant 0 : i32
    %c0_i32_0 = arith.constant 0 : i32
    %c0_i32_1 = arith.constant 0 : i32
    return %c0_i32, %c0_i32_0 : i32, i32
  }
  func.func @transform_24(%arg0: i32, %arg1: i32) -> (i32, i32, i32) {
    %c0_i32 = arith.constant 0 : i32
    %c0_i32_0 = arith.constant 0 : i32
    %c0_i32_1 = arith.constant 0 : i32
    return %arg0, %c0_i32, %c0_i32_0 : i32, i32, i32
  }
}

</mosaic_0001>

<bundles_post_ra>
// kernel: bert_cnn_forward.1
= control target key start
LH: loop header
LB: loop body
LE: loop exit
PB: predicated region body
PF: predicated region fallthrough
CT: control target
= control target key end

     0   :  { %s3204_s27 = smov 0   ;;  %s3206_s28 = smov 0   ;;  %s3601_s0 = inlined_call_operand.vmem [shape: f32[2,8,32], index: 0, kind: input, shape index: {}]   ;;  %s3602_s1 = inlined_call_operand.vmem [shape: f32[2,1,8], index: 1, kind: input, shape index: {}]   ;;  %s3603_s2 = inlined_call_operand.vmem [shape: f32[1,32], index: 2, kind: input, shape index: {}]   ;;  %s3604_s3 = inlined_call_operand.vmem [shape: f32[1,32], index: 3, kind: input, shape index: {}]   ;;  %s3605_s4 = inlined_call_operand.vmem [shape: bf16[2,32,96], index: 4, kind: input, shape index: {}]   ;;  %s3606_s5 = inlined_call_operand.vmem [shape: f32[2,1,96], index: 5, kind: input, shape index: {}]   ;;  %s3607_s6 = inlined_call_operand.vmem [shape: bf16[2,32,32], index: 6, kind: input, shape index: {}]   ;;  %s3608_s7 = inlined_call_operand.vmem [shape: f32[2,1,32], index: 7, kind: input, shape index: {}]   ;;  %s3609_s8 = inlined_call_operand.vmem [shape: f32[2,1,32], index: 8, kind: input, shape index: {}]   ;;  %s3610_s9 = inlined_call_operand.vmem [shape: f32[2,1,32], index: 9, kind: input, shape index: {}]   ;;  %s3611_s10 = inlined_call_operand.vmem [shape: bf16[2,32,64], index: 10, kind: input, shape index: {}]   ;;  %s3612_s11 = inlined_call_operand.vmem [shape: f32[2,1,64], index: 11, kind: input, shape index: {}]   ;;  %s3613_s12 = inlined_call_operand.vmem [shape: bf16[2,64,32], index: 12, kind: input, shape index: {}]   ;;  %s3614_s13 = inlined_call_operand.vmem [shape: f32[2,1,32], index: 13, kind: input, shape index: {}]   ;;  %s3615_s14 = inlined_call_operand.vmem [shape: f32[2,1,32], index: 14, kind: input, shape index: {}]   ;;  %s3616_s15 = inlined_call_operand.vmem [shape: f32[2,1,32], index: 15, kind: input, shape index: {}]   ;;  %s3617_s16 = inlined_call_operand.vmem [shape: bf16[1,32,8], index: 16, kind: input, shape index: {}]   ;;  %s3618_s17 = inlined_call_operand.vmem [shape: f32[1,8], index: 17, kind: input, shape index: {}]   ;;  %s3619_s18 = inlined_call_operand.vmem [shape: bf16[2,32,8], index: 18, kind: input, shape index: {}]   ;;  %s3620_s19 = inlined_call_operand.vmem [shape: f32[1,8], index: 19, kind: input, shape index: {}]   ;;  %s3621_s20 = inlined_call_operand.vmem [shape: bf16[3,32,8], index: 20, kind: input, shape index: {}]   ;;  %s3622_s21 = inlined_call_operand.vmem [shape: f32[1,8], index: 21, kind: input, shape index: {}]   ;;  %s3623_s22 = inlined_call_operand.vmem [shape: f32[1,24], index: 22, kind: input, shape index: {}]   ;;  %s3624_s23 = inlined_call_operand.<no memory space> [shape: f32[1,1], index: 23, kind: input, shape index: {}]   ;;  %s3625_s24 = inlined_call_operand.vmem [shape: f32[2,1,1], index: 24, kind: output, shape index: {}]  }
   0x1   :  { %3634 = sst [smem:[#allocation11_spill]] %s3601_s0  ;;  %v29_v0 = vstv %s3624_s23  ;;  %s3212_s29 = smov 0  }
   0x2   :  { %3635 = sst [smem:[#allocation12_spill]] %s3602_s1  ;;  %30 = vst [vmem:[#allocation3] sm:$0x1] %v29_v0 }
   0x3   :  { %3636 = sst [smem:[#allocation13_spill]] %s3603_s2  ;;  %s3210_s2 = smov 0  }
   0x4   :  { %3637 = sst [smem:[#allocation14_spill]] %s3604_s3 }
   0x5   :  { %3638 = sst [smem:[#allocation15_spill]] %s3605_s4 }
   0x6   :  { %3639 = sst [smem:[#allocation16_spill]] %s3606_s5 }
   0x7   :  { %3640 = sst [smem:[#allocation17_spill]] %s3607_s6  ;;  %s3208_s6 = smov 0  }
   0x8   :  { %3641 = sst [smem:[#allocation18_spill]] %s3608_s7 }
   0x9   :  { %3642 = sst [smem:[#allocation19_spill]] %s3609_s8 }
   0xa   :  { %3643 = sst [smem:[#allocation20_spill]] %s3617_s16 }
   0xb   :  { %3644 = sst [smem:[#allocation21_spill]] %s3618_s17 }
   0xc   :  { %3645 = sst [smem:[#allocation22_spill]] %s3619_s18 }
   0xd   :  { %3646 = sst [smem:[#allocation23_spill]] %s3620_s19 }
   0xe   :  { %3647 = sst [smem:[#allocation24_spill]] %s3621_s20 }
   0xf   :  { %3648 = sst [smem:[#allocation25_spill]] %s3622_s21 }
  0x10   :  { %3649 = sst [smem:[#allocation26_spill]] %s3623_s22 }
  0x11   :  { %3650 = sst [smem:[#allocation27_spill]] %s3625_s24 }
  0x12 LB: > { %3651 = sst [smem:[#allocation4_spill]] %s3046_s27  ;;  %s45_s23 = sadd.s32 1, %s3054_s6  ;;  %s3062_s29 = sphi %s3212_s29, %s36_s29   ;;  %s3058_s2 = sphi %s3210_s2, %s3694_s2   ;;  %s3054_s6 = sphi %s3208_s6, %s3693_s6   ;;  %s3050_s28 = sphi %s3206_s28, %s3692_s28   ;;  %s3046_s27 = sphi %s3204_s27, %s3691_s27  }
  0x13   : > { %3652 = sst [smem:[#allocation5_spill]] %s3054_s6  ;;  %s48_s0 = sadd.s32 1, %s3058_s2 }
  0x14   : > { %3653 = sst [smem:[#allocation6_spill]] %s3058_s2  ;;  %p46_p0 = scmp.ge.s32.totalorder %s45_s23, 2 }
  0x15   : > { %3654 = sst [smem:[#allocation7_spill]] %s3062_s29  ;;  %p2692_p1 = scmp.ge.s32.totalorder %s3062_s29, 1 }
  0x16   : > { %p787_p2 = scmp.lt.s32.totalorder %s3062_s29, 5  ;;  %s3696_s23 = smov (%p46_p0, %s45_s23), 0 }
  0x17   : > { %3655 = sst [smem:[#allocation8_spill]] %s3696_s23  ;;  %s3698_s0 = smov (!%p46_p0, %s48_s0), %s3058_s2 }
  0x18   : > { %p788_p3 = pnand %p2692_p1, %p787_p2  ;;  %p50_p4 = scmp.ge.s32.totalorder %s3698_s0, 2 }
  0x1a   : > { %s3700_s0 = smov (%p50_p4, %s3698_s0), 0  ;;  %791 = sbr.rel (%p788_p3) target bundleno = 3464 (0xd88), region = 116 }
  0x1b   : > { %3656 = sst [smem:[#allocation9_spill]] %s3700_s0 }
  0x1f   : > { %p897_p5 = scmp.lt.s32.totalorder %s3050_s28, 1  ;;  %p904_p6 = scmp.lt.s32.totalorder %s3046_s27, 1 }
  0x20   : > { %s3658_s26 = sld [smem:[#allocation11_spill]] }
  0x21   : > { %s3702_s28 = smov (!%p897_p5, %s3050_s28), 1  ;;  %s3659_s29 = sld [smem:[#allocation15_spill]] }
  0x22   : > { %s3240_s7 = scalar_select %p904_p6, %s3046_s27, 1 }
  0x23   : > { %s2693_s30 = sshll.u32 %s3702_s28, 3  ;;  %s3661_s19 = sld [smem:[#allocation16_spill]] }
  0x24   : > { %s2778_s23 = sshll.u32 %s3240_s7, 4  ;;  %s3662_s3 = sld [smem:[#allocation17_spill]] }
  0x25   : > { %s941_s1 = scalar_lea.vmem %s3614_s13, %s3240_s7  ;;  %s3665_s21 = sld [smem:[#allocation27_spill]] }
  0x26   : > { %s900_s0 = scalar_lea.vmem %s3658_s26, %s2693_s30  ;;  %s3666_s5 = sld [smem:[#allocation4_spill]] }
  0x27   : > { %s3254_s22 = scalar_lea.vmem %s3659_s29, %s2778_s23  ;;  %s947_s29 = scalar_lea.vmem %s3616_s15, %s3240_s7 }
  0x28   : > { %3660 = sst [smem:[#allocation10_spill]] %s3254_s22  ;;  %s944_s22 = scalar_lea.vmem %s3615_s14, %s3240_s7 }
  0x29   : > { %s911_s20 = scalar_lea.vmem %s3661_s19, %s3240_s7  ;;  %s3280_s19 = scalar_lea.vmem %s3611_s10, %s2778_s23 }
  0x2a   : > { %s3263_s25 = scalar_lea.vmem %s3662_s3, %s2778_s23  ;;  %s2781_s3 = sshll.u32 %s3240_s7, 5 }
  0x2b   : > { %s3294_s26 = scalar_lea.vmem %s3613_s12, %s2781_s3  ;;  %s950_s24 = scalar_lea.vmem %s3665_s21, %s3702_s28 }
  0x2c   : > { %p2702_p7 = scmp.ne.s32.totalorder %s3666_s5, 0 }
  0x2d   : > { %s3667_s3 = sld [smem:[#allocation13_spill]] (!%p2702_p7) }
  0x2e   : > { %955 = sbr.rel (%p2702_p7) target bundleno = 361 (0x169), region = 120  ;;  %s3668_s8 = sld [smem:[#allocation14_spill]] (!%p2702_p7) }
  0x33   : > { %v956_v1 = vld [vmem:[%s900_s0] sm:$0xff]  ;;  %vm959_vm0 = vcmask 261120  }
  0x34   : > { %v960_v2 = vsel %vm959_vm0, %v956_v1, 0.0  ;;  %v2703_v12 = vld [vmem:[%s3667_s3] ss:$0 sm:$0xff] }
  0x35   : > { %961 = vadd.xlane.f32.xlu0 %v960_v2  ;;  %v2704_v14 = vld [vmem:[%s3668_s8] ss:$0 sm:$0xff] }
  0xbe   : > { %v962_v3 = vpop.xlane.xlu0 %961 }
  0xbf   : > { %v964_v4 = vmul.f32 0.03125, %v962_v3 }
  0xc1   : > { %v965_v5 = vsub.f32 %v956_v1, %v964_v4 }
  0xc3   : > { %v966_v6 = vmul.f32 %v965_v5, %v965_v5 }
  0xc5   : > { %v967_v7 = vsel %vm959_vm0, %v966_v6, 0.0 }
  0xc6   : > { %968 = vadd.xlane.f32.xlu0 %v967_v7 }
 0x14f   : > { %v969_v8 = vpop.xlane.xlu0 %968 }
 0x150   : > { %v970_v9 = vmul.f32 0.03125, %v969_v8 }
 0x152   : > { %v971_v10 = vadd.f32 1e-12, %v970_v9 }
 0x154   : > { %2982 = vrsqrt.f32 %v971_v10 }
 0x161   : > { %v2983_v11 = vpop.eup %2982 }
 0x162   : > { %v973_v13 = vmul.f32 %v2983_v11, %v965_v5 }
 0x164   : > { %v980_v15 = vmul.f32 %v2703_v12, %v973_v13 }
 0x166   : > { %v987_v16 = vadd.f32 %v2704_v14, %v980_v15 }
 0x168   : > { %988 = vst.msk [vmem:[#allocation2] sm:$0xff] %vm959_vm0, %v987_v16 }
 0x169 PF: > { %s3669_s30 = sld [smem:[#allocation10_spill]]  ;;  %v3064_v18 = vmov 0.0   ;;  %vm3065_vm1 = vmmov 0   ;;  %vm1014_vm2 = vcmask 261120   ;;  %v2705_v22 = vld [vmem:[%s911_s20] ss:$0 sm:$0xff]  ;;  %v1066_v31 = vlaneseq }
 0x16a   : > { %2822 = vmatprep.subr.bf16.mxu0 %v3064_v18  ;;  %2830 = vmatprep.subr.bf16.mxu1 %v3064_v18  ;;  %s3066_s23 = smov 112   ;;  %s3067_s17 = smov 96   ;;  %v3068_v29 = vmov 1983009808   ;;  %v3069_v37 = vmov 1934713408  }
 0x16b   : > { %2826 = vmatprep.mubr.msk.bf16.mxu0 %vm3065_vm1, %v3064_v18  ;;  %2832 = vmatprep.mubr.msk.bf16.mxu1 %vm3065_vm1, %v3064_v18  ;;  %v1064_v30 = vunpack.c.l.s4 %v3068_v29  ;;  %v3347_v33 = vshrl.u32 %v1066_v31, 7  ;;  %v1095_v38 = vunpack.c.l.s4 %v3069_v37  ;;  %vm1428_vm3 = vcmask 130048   ;;  %s3671_s18 = sld [smem:[#allocation12_spill]]  ;;  %s3070_s5 = smov 64  }
 0x16c   : > { %vm1532_vm4 = vcmask 64512   ;;  %vm1560_vm5 = vcmask 1043456   ;;  %s3673_s4 = sld [smem:[#allocation18_spill]]  ;;  %vm1985_vm6 = vcmask 523264  }
 0x16d   : > { %v1065_v32 = vunpack.c.0.s8 %v1064_v30  ;;  %v1096_v40 = vunpack.c.0.s8 %v1095_v38  ;;  %s3675_s6 = sld [smem:[#allocation19_spill]] }
 0x16e   : > { %s3679_s0 = sld [smem:[#allocation4_spill]] }
 0x16f   : > { %v2984_v17 = vld [vmem:[%s3669_s30 + $0x8] sm:$0xff]   ;;  %v2985_v19 = vld [vmem:[%s3669_s30] sm:$0xff]   ;;  %v3354_v36 = vsub.s32 %v1065_v32, %v3347_v33  ;;  %v3364_v48 = vsub.s32 %v1096_v40, %v3347_v33 }
 0x170   : > { %2823 = vmatpush3.bf16.msra.mxu0 %v2984_v17  ;;  %v3324_v20 = vld [vmem:[#allocation2] sm:$0xff] }
 0x171   : > { %2824 = vmatprep.subr.bf16.mxu0 %v3064_v18  ;;  %v990_v21 = vpack.c.bf16 %v3324_v20, %v3324_v20  ;;  %s3672_s21 = scalar_lea.vmem %s3671_s18, %s3702_s28  ;;  %s3678_s18 = scalar_lea.vmem %s3612_s11, %s3240_s7 }
 0x172   : > { %s3674_s8 = scalar_lea.vmem %s3673_s4, %s3240_s7 }
 0x173   : > { %s3676_s2 = scalar_lea.vmem %s3675_s6, %s3240_s7 }
 0x174   : > { %2825 = vmatpush3.bf16.msra.mxu0 %v2985_v19  ;;  %p2740_p8 = scmp.ge.s32.totalorder %s3679_s0, 1 }
 0x175   : > { %2836 = vmatprep.subr.bf16.mxu0 %v3064_v18 }
 0x177   : > { %2827 = vmatmul.mubr.msk.bf16.vlgmr.msra.gmra.mxu0 %vm1014_vm2, %v990_v21 }
 0x178   : > { %2838 = vmatprep.mubr.msk.bf16.mxu0 %vm3065_vm1, %v3064_v18 }
 0x237   : > { %v1052_v23 = vpop.f32.mrf.mxu0 }
 0x238   : > { %v3340_v24 = vadd.f32 %v2705_v22, %v1052_v23 }
 0x239   : > { %v2828_v25 = vpop.f32.mrf.mxu0 }
 0x23a   : > { %1059 = vrot.lane.b32.xlu0 %v3340_v24, %s3066_s23  ;;  %v1062_v35 = vcombine.high %v3340_v24, %v3064_v18  ;;  %v1069_v44 = vrot.slane %v3340_v24, %v3354_v36 }
 0x23b   : > { %v1055_v26 = vpop.f32.mrf.mxu0 }
 0x23c   : > { %v1076_v41 = vrot.slane %v1062_v35, %v3354_v36 }
 0x23d   : > { %v2829_v27 = vpop.f32.mrf.mxu0 }
 0x23e   : > { %1180 = vrot.lane.b32.xlu0 %v3340_v24, %s3067_s17 }
 0x2ac   : > { %v3344_v28 = vpop.permute.xlu0 %1059 }
 0x2ad   : > { %1182 = vrot.lane.b32.xlu1 %v3344_v28, %s3067_s17  ;;  %v1077_v34 = vcombine.high %v3344_v28, %v3064_v18  ;;  %v1084_v42 = vrot.slane %v3344_v28, %v3354_v36 }
 0x2af   : > { %v1091_v39 = vrot.slane %v1077_v34, %v3354_v36  ;;  %v1092_v49 = vcombine.low %v1069_v44, %v1084_v42  ;;  %v1093_v50 = vcombine.high %v1069_v44, %v1084_v42 }
 0x2b0   : > { %v1181_v43 = vpop.permute.xlu0 %1180 }
 0x2b1   : > { %v1108_v45 = vcombine.low %v1076_v41, %v1091_v39  ;;  %v1109_v46 = vcombine.high %v1076_v41, %v1091_v39  ;;  %v1186_v47 = vcombine.high %v1181_v43, %v3064_v18  ;;  %v1193_v52 = vrot.slane %v1181_v43, %v3354_v36 }
 0x2b2   : > { %v1100_v61 = vrot.slane %v1092_v49, %v3364_v48  ;;  %v1107_v62 = vrot.slane %v1093_v50, %v3364_v48 }
 0x2b3   : > { %v1116_v55 = vrot.slane %v1108_v45, %v3364_v48  ;;  %v1123_v56 = vrot.slane %v1109_v46, %v3364_v48  ;;  %v1200_v57 = vrot.slane %v1186_v47, %v3354_v36  ;;  %v2717_v47 = vld [vmem:[%s3672_s21] ss:$0 sm:$0xff] }
 0x2b4   : > { %v1128_v9 = vcombine.low %v1100_v61, %v1107_v62  ;;  %v2709_v10 = vcombine.high %v1100_v61, %v1107_v62 }
 0x2b5   : > { %v1144_v3 = vcombine.low %v1116_v55, %v1123_v56  ;;  %v2710_v4 = vcombine.high %v1116_v55, %v1123_v56 }
 0x2b6   : > { %v1135_v22 = vrot.slane %v1128_v9, %v3354_v36  ;;  %v1143_v23 = vrot.slane %v2709_v10, %v3354_v36 }
 0x2b7   : > { %v1151_v15 = vrot.slane %v1144_v3, %v3354_v36  ;;  %v1159_v21 = vrot.slane %v2710_v4, %v3354_v36 }
 0x2b8   : > { %v1160_v32 = vcombine.low %v1135_v22, %v1143_v23 }
 0x2b9   : > { %v1168_v29 = vcombine.low %v1151_v15, %v1159_v21 }
 0x2ba   : > { %v1167_v40 = vrot.slane %v1160_v32, %v3364_v48 }
 0x2bb   : > { %v1175_v37 = vrot.slane %v1168_v29, %v3364_v48 }
 0x2bd   : > { %v1176_v41 = vcombine.low %v1167_v40, %v1175_v37  ;;  %v1177_v42 = vcombine.high %v1167_v40, %v1175_v37 }
 0x2bf   : > { %v1178_v43 = vpack.c.bf16 %v1176_v41, %v1176_v41  ;;  %v1179_v44 = vpack.c.bf16 %v1177_v42, %v1177_v42 }
 0x31f   : > { %v1183_v51 = vpop.permute.xlu1 %1182 }
 0x320   : > { %v1201_v53 = vcombine.high %v1183_v51, %v3064_v18  ;;  %v1208_v54 = vrot.slane %v1183_v51, %v3354_v36 }
 0x322   : > { %v1215_v58 = vrot.slane %v1201_v53, %v3354_v36  ;;  %v1216_v59 = vcombine.low %v1193_v52, %v1208_v54  ;;  %v1217_v60 = vcombine.high %v1193_v52, %v1208_v54 }
 0x324   : > { %v1224_v63 = vrot.slane %v1216_v59, %v3364_v48  ;;  %v1231_v0 = vrot.slane %v1217_v60, %v3364_v48  ;;  %v1232_v1 = vcombine.low %v1200_v57, %v1215_v58  ;;  %v1233_v2 = vcombine.high %v1200_v57, %v1215_v58 }
 0x326   : > { %v1240_v5 = vrot.slane %v1232_v1, %v3364_v48  ;;  %v1247_v6 = vrot.slane %v1233_v2, %v3364_v48  ;;  %v1252_v7 = vcombine.low %v1224_v63, %v1231_v0  ;;  %v2711_v8 = vcombine.high %v1224_v63, %v1231_v0 }
 0x328   : > { %v1268_v11 = vcombine.low %v1240_v5, %v1247_v6  ;;  %v2712_v12 = vcombine.high %v1240_v5, %v1247_v6  ;;  %v1259_v13 = vrot.slane %v1252_v7, %v3354_v36  ;;  %v1267_v14 = vrot.slane %v2711_v8, %v3354_v36 }
 0x32a   : > { %v1275_v16 = vrot.slane %v1268_v11, %v3354_v36  ;;  %v1283_v17 = vrot.slane %v2712_v12, %v3354_v36  ;;  %v1284_v19 = vcombine.low %v1259_v13, %v1267_v14 }
 0x32c   : > { %v1292_v25 = vcombine.low %v1275_v16, %v1283_v17  ;;  %v1291_v26 = vrot.slane %v1284_v19, %v3364_v48 }
 0x32e   : > { %v1299_v27 = vrot.slane %v1292_v25, %v3364_v48 }
 0x330   : > { %v1300_v30 = vcombine.low %v1291_v26, %v1299_v27  ;;  %v1301_v31 = vcombine.high %v1291_v26, %v1299_v27 }
 0x332   : > { %v1302_v34 = vpack.c.bf16 %v1300_v30, %v1300_v30  ;;  %v1303_v35 = vpack.c.bf16 %v1301_v31, %v1301_v31 }
 0x334   : > { %v1433_v38 = vsel %vm1428_vm3, %v1302_v34, 0  ;;  %v1479_v39 = vsel %vm1428_vm3, %v1303_v35, 0 }
 0x335   : > { %2831 = vmatpush3.bf16.xpose.msra.mxu1 %v1433_v38  ;;  %2837 = vmatpush3.bf16.xpose.msra.mxu0 %v1479_v39 }
 0x336   : > { %2842 = vmatprep.subr.bf16.mxu1 %v3064_v18  ;;  %2848 = vmatprep.subr.bf16.mxu0 %v3064_v18 }
 0x33c   : > { %2833 = vmatmul.mubr.msk.bf16.vlgmr.msra.gmra.mxu1 %vm1428_vm3, %v1178_v43  ;;  %2839 = vmatmul.mubr.msk.bf16.vlgmr.msra.gmra.mxu0 %vm1428_vm3, %v1179_v44 }
 0x33d   : > { %2844 = vmatprep.mubr.msk.bf16.mxu1 %vm3065_vm1, %v3064_v18  ;;  %2850 = vmatprep.mubr.msk.bf16.mxu0 %vm3065_vm1, %v3064_v18 }
 0x3fc   : > { %v1469_v45 = vpop.f32.mrf.mxu1  ;;  %v1515_v46 = vpop.f32.mrf.mxu0 }
 0x3fd   : > { %v1521_v49 = vmul.f32 0.25, %v1469_v45  ;;  %v1522_v50 = vmul.f32 0.25, %v1515_v46 }
 0x3fe   : > { %v2834_v51 = vpop.f32.mrf.mxu1  ;;  %v2840_v52 = vpop.f32.mrf.mxu0 }
 0x3ff   : > { %v1530_v53 = vadd.f32 %v2717_v47, %v1521_v49  ;;  %v1531_v54 = vadd.f32 %v2717_v47, %v1522_v50 }
 0x400   : > { %v1472_v55 = vpop.f32.mrf.mxu1  ;;  %v1518_v56 = vpop.f32.mrf.mxu0 }
 0x401   : > { %v1533_v57 = vsel %vm1532_vm4, %v1530_v53, -inf  ;;  %v1536_v58 = vsel %vm1532_vm4, %v1531_v54, -inf }
 0x402   : > { %1534 = vmax.xlane.f32.xlu1 %v1533_v57  ;;  %v2835_v59 = vpop.f32.mrf.mxu1  ;;  %1537 = vmax.xlane.f32.xlu0 %v1536_v58  ;;  %v2841_v60 = vpop.f32.mrf.mxu0 }
 0x48b   : > { %v1535_v61 = vpop.xlane.xlu1 %1534  ;;  %v1538_v62 = vpop.xlane.xlu0 %1537 }
 0x48c   : > { %v1539_v63 = vsub.f32 %v1530_v53, %v1535_v61  ;;  %v1540_v0 = vsub.f32 %v1531_v54, %v1538_v62  ;;  %v2986_v54 = vld [vmem:[%s3263_s25 + $0x8] sm:$0xff]  }
 0x48e   : > { %v1541_v1 = vmul.f32 1.442695, %v1539_v63  ;;  %v1543_v2 = vmul.f32 1.442695, %v1540_v0 }
 0x490   : > { %2994 = vpow2.f32 %v1541_v1 }
 0x491   : > { %2996 = vpow2.f32 %v1543_v2 }
 0x49d   : > { %v2995_v3 = vpop.eup %2994 }
 0x49e   : > { %v2997_v4 = vpop.eup %2996  ;;  %v1545_v5 = vsel %vm1532_vm4, %v2995_v3, 0.0 }
 0x49f   : > { %1546 = vadd.xlane.f32.xlu0 %v1545_v5  ;;  %v1548_v6 = vsel %vm1532_vm4, %v2997_v4, 0.0  ;;  %v2987_v5 = vld [vmem:[%s3263_s25] sm:$0xff]   ;;  %s3071_s25 = smov 16  }
 0x4a0   : > { %1549 = vadd.xlane.f32.xlu1 %v1548_v6 }
 0x4b1   : > { %1306 = vrot.lane.b32.xlu1 %v3344_v28, %s3070_s5 }
 0x4b5   : > { %1304 = vrot.lane.b32.xlu0 %v3340_v24, %s3070_s5 }
 0x528   : > { %v1547_v7 = vpop.xlane.xlu0 %1546 }
 0x529   : > { %v1550_v8 = vpop.xlane.xlu1 %1549  ;;  %2998 = vrcp.f32 %v1547_v7 }
 0x52a   : > { %3000 = vrcp.f32 %v1550_v8 }
 0x52c   : > { %v1305_v9 = vpop.permute.xlu0 %1304 }
 0x52d   : > { %v1307_v10 = vpop.permute.xlu1 %1306  ;;  %v1310_v11 = vcombine.high %v1305_v9, %v3064_v18  ;;  %v1317_v12 = vrot.slane %v1305_v9, %v3354_v36 }
 0x52e   : > { %v1325_v13 = vcombine.high %v1307_v10, %v3064_v18  ;;  %v1332_v14 = vrot.slane %v1307_v10, %v3354_v36 }
 0x52f   : > { %v1324_v15 = vrot.slane %v1310_v11, %v3354_v36 }
 0x530   : > { %v1339_v28 = vrot.slane %v1325_v13, %v3354_v36  ;;  %v1340_v16 = vcombine.low %v1317_v12, %v1332_v14  ;;  %v1341_v24 = vcombine.high %v1317_v12, %v1332_v14 }
 0x532   : > { %v1348_v17 = vrot.slane %v1340_v16, %v3364_v48  ;;  %v1355_v19 = vrot.slane %v1341_v24, %v3364_v48  ;;  %v1356_v21 = vcombine.low %v1324_v15, %v1339_v28  ;;  %v1357_v22 = vcombine.high %v1324_v15, %v1339_v28 }
 0x534   : > { %v1364_v23 = vrot.slane %v1356_v21, %v3364_v48  ;;  %v1371_v25 = vrot.slane %v1357_v22, %v3364_v48  ;;  %v1376_v26 = vcombine.low %v1348_v17, %v1355_v19  ;;  %v2713_v27 = vcombine.high %v1348_v17, %v1355_v19 }
 0x536   : > { %v1383_v29 = vrot.slane %v1376_v26, %v3354_v36  ;;  %v1391_v30 = vrot.slane %v2713_v27, %v3354_v36  ;;  %v1392_v31 = vcombine.low %v1364_v23, %v1371_v25  ;;  %v2714_v32 = vcombine.high %v1364_v23, %v1371_v25  ;;  %v2999_v39 = vpop.eup %2998 }
 0x537   : > { %v3001_v42 = vpop.eup %3000  ;;  %v1553_v47 = vmul.f32 %v2999_v39, %v2995_v3 }
 0x538   : > { %v1399_v34 = vrot.slane %v1392_v31, %v3354_v36  ;;  %v1407_v35 = vrot.slane %v2714_v32, %v3354_v36  ;;  %v1408_v37 = vcombine.low %v1383_v29, %v1391_v30  ;;  %v1554_v49 = vmul.f32 %v3001_v42, %v2997_v4 }
 0x539   : > { %v1555_v52 = vpack.c.bf16 %v1553_v47, %v1553_v47  ;;  %v2989_v47 = vld [vmem:[%s3280_s19] sm:$0xff]  }
 0x53a   : > { %v1416_v38 = vcombine.low %v1399_v34, %v1407_v35  ;;  %v1415_v40 = vrot.slane %v1408_v37, %v3364_v48  ;;  %v1556_v53 = vpack.c.bf16 %v1554_v49, %v1554_v49 }
 0x53c   : > { %v1423_v41 = vrot.slane %v1416_v38, %v3364_v48 }
 0x53e   : > { %v1424_v43 = vcombine.low %v1415_v40, %v1423_v41  ;;  %v1425_v44 = vcombine.high %v1415_v40, %v1423_v41 }
 0x540   : > { %v1426_v45 = vpack.c.bf16 %v1424_v43, %v1424_v43  ;;  %v1427_v46 = vpack.c.bf16 %v1425_v44, %v1425_v44 }
 0x542   : > { %v1562_v50 = vsel %vm1560_vm5, %v1426_v45, 0  ;;  %v1608_v51 = vsel %vm1560_vm5, %v1427_v46, 0  ;;  %v2988_v46 = vld [vmem:[%s3280_s19 + $0x8] sm:$0xff]   ;;  %s3677_s19 = scalar_lea.vmem %s3610_s9, %s3240_s7 }
 0x543   : > { %2843 = vmatpush3.bf16.msra.mxu1 %v1562_v50  ;;  %2849 = vmatpush3.bf16.msra.mxu0 %v1608_v51 }
 0x544   : > { %2854 = vmatprep.subr.bf16.mxu1 %v3064_v18  ;;  %2862 = vmatprep.subr.bf16.mxu0 %v3064_v18 }
 0x546   : > { %2845 = vmatmul.mubr.msk.bf16.vlgmr.msra.gmra.mxu1 %vm1532_vm4, %v1555_v52  ;;  %2851 = vmatmul.mubr.msk.bf16.vlgmr.msra.gmra.mxu0 %vm1532_vm4, %v1556_v53  ;;  %v2726_v52 = vld [vmem:[%s3676_s2] ss:$0 sm:$0xff] }
 0x547   : > { %2858 = vmatprep.mubr.msk.bf16.mxu1 %vm3065_vm1, %v3064_v18  ;;  %2866 = vmatprep.mubr.msk.bf16.mxu0 %vm3065_vm1, %v3064_v18 }
 0x548   : > { %2855 = vmatpush3.bf16.msra.mxu1 %v2986_v54  ;;  %2863 = vmatpush3.bf16.msra.mxu0 %v2988_v46  ;;  %v2727_v54 = vld [vmem:[%s3677_s19] ss:$0 sm:$0xff] }
 0x549   : > { %2856 = vmatprep.subr.bf16.mxu1 %v3064_v18  ;;  %2864 = vmatprep.subr.bf16.mxu0 %v3064_v18 }
 0x54c   : > { %2857 = vmatpush3.bf16.msra.mxu1 %v2987_v5  ;;  %2865 = vmatpush3.bf16.msra.mxu0 %v2989_v47 }
 0x54d   : > { %2870 = vmatprep.subr.bf16.mxu1 %v3064_v18 }
 0x606   : > { %v1598_v55 = vpop.f32.mrf.mxu1  ;;  %v1644_v56 = vpop.f32.mrf.mxu0 }
 0x607   : > { %v1650_v57 = vcombine.high %v1598_v55, %v3064_v18  ;;  %v1657_v58 = vrot.slane %v1598_v55, %v3354_v36  ;;  %v1665_v59 = vcombine.high %v1644_v56, %v3064_v18  ;;  %v1672_v60 = vrot.slane %v1644_v56, %v3354_v36 }
 0x608   : > { %v2846_v61 = vpop.f32.mrf.mxu1  ;;  %v2852_v62 = vpop.f32.mrf.mxu0 }
 0x609   : > { %v1664_v63 = vrot.slane %v1650_v57, %v3354_v36  ;;  %v1679_v0 = vrot.slane %v1665_v59, %v3354_v36  ;;  %v1680_v1 = vcombine.low %v1657_v58, %v1672_v60  ;;  %v1681_v2 = vcombine.high %v1657_v58, %v1672_v60  ;;  %v2990_v58 = vld [vmem:[%s3294_s26 + $0x18] sm:$0xff]   ;;  %v2991_v59 = vld [vmem:[%s3294_s26 + $0x10] sm:$0xff]   ;;  %v2992_v60 = vld [vmem:[%s3294_s26 + $0x8] sm:$0xff]  }
 0x60a   : > { %v1601_v3 = vpop.f32.mrf.mxu1  ;;  %v1647_v4 = vpop.f32.mrf.mxu0  ;;  %v2993_v61 = vld [vmem:[%s3294_s26] sm:$0xff]  }
 0x60b   : > { %v1688_v6 = vrot.slane %v1680_v1, %v3364_v48  ;;  %v1695_v7 = vrot.slane %v1681_v2, %v3364_v48  ;;  %v1696_v8 = vcombine.low %v1664_v63, %v1679_v0  ;;  %v1697_v9 = vcombine.high %v1664_v63, %v1679_v0  ;;  %v2728_v62 = vld [vmem:[%s3678_s18] ss:$0 sm:$0xff] }
 0x60c   : > { %v2847_v10 = vpop.f32.mrf.mxu1  ;;  %v2853_v11 = vpop.f32.mrf.mxu0 }
 0x60d   : > { %v1704_v12 = vrot.slane %v1696_v8, %v3364_v48  ;;  %v1711_v13 = vrot.slane %v1697_v9, %v3364_v48  ;;  %v1716_v14 = vcombine.low %v1688_v6, %v1695_v7  ;;  %v2720_v15 = vcombine.high %v1688_v6, %v1695_v7 }
 0x60f   : > { %v1723_v28 = vrot.slane %v1716_v14, %v3354_v36  ;;  %v1731_v16 = vrot.slane %v2720_v15, %v3354_v36  ;;  %v1732_v24 = vcombine.low %v1704_v12, %v1711_v13  ;;  %v2721_v17 = vcombine.high %v1704_v12, %v1711_v13  ;;  %v2732_v13 = vld [vmem:[%s941_s1] ss:$0 sm:$0xff] }
 0x611   : > { %v1739_v19 = vrot.slane %v1732_v24, %v3354_v36  ;;  %v1747_v21 = vrot.slane %v2721_v17, %v3354_v36  ;;  %v1748_v22 = vcombine.low %v1723_v28, %v1731_v16  ;;  %v2722_v36 = vld [vmem:[%s3674_s8] ss:$0 sm:$0xff] }
 0x613   : > { %v1756_v23 = vcombine.low %v1739_v19, %v1747_v21  ;;  %v1755_v25 = vrot.slane %v1748_v22, %v3364_v48 }
 0x615   : > { %v1763_v26 = vrot.slane %v1756_v23, %v3364_v48 }
 0x617   : > { %v1765_v27 = vcombine.high %v1755_v25, %v1763_v26  ;;  %v1764_v29 = vcombine.low %v1755_v25, %v1763_v26 }
 0x619   : > { %1767 = vrot.lane.b32.xlu1 %v1765_v27, %s3071_s25 }
 0x68b   : > { %v1768_v30 = vpop.permute.xlu1 %1767 }
 0x68c   : > { %v1770_v31 = vsel %vm1428_vm3, %v1764_v29, %v1768_v30 }
 0x68d   : > { %v1771_v32 = vpack.c.bf16 %v1770_v31, %v1770_v31 }
 0x68f   : > { %2859 = vmatmul.mubr.msk.bf16.vlgmr.msra.gmra.mxu1 %vm1014_vm2, %v1771_v32  ;;  %v2738_v32 = vld [vmem:[%s944_s22] ss:$0 sm:$0xff] }
 0x690   : > { %2878 = vmatprep.mubr.msk.bf16.mxu1 %vm3065_vm1, %v3064_v18  ;;  %2871 = vmatpush3.bf16.msra.mxu1 %v2990_v58 }
 0x691   : > { %2872 = vmatprep.subr.bf16.mxu1 %v3064_v18 }
 0x694   : > { %2873 = vmatpush3.bf16.msra.mxu1 %v2991_v59 }
 0x695   : > { %2874 = vmatprep.subr.bf16.mxu1 %v3064_v18 }
 0x698   : > { %2875 = vmatpush3.bf16.msra.mxu1 %v2992_v60 }
 0x699   : > { %2876 = vmatprep.subr.bf16.mxu1 %v3064_v18 }
 0x69c   : > { %2877 = vmatpush3.bf16.msra.mxu1 %v2993_v61 }
 0x74f   : > { %v1832_v48 = vpop.f32.mrf.mxu1 }
 0x750   : > { %v1833_v34 = vadd.f32 %v2722_v36, %v1832_v48  ;;  %v2739_v48 = vld [vmem:[%s947_s29] ss:$0 sm:$0xff] }
 0x751   : > { %v2860_v35 = vpop.f32.mrf.mxu1 }
 0x752   : > { %v1838_v37 = vadd.f32 %v1833_v34, %v3324_v20 }
 0x753   : > { %v1835_v38 = vpop.f32.mrf.mxu1 }
 0x754   : > { %v1841_v39 = vsel %vm1014_vm2, %v1838_v37, 0.0 }
 0x755   : > { %1842 = vadd.xlane.f32.xlu0 %v1841_v39  ;;  %v2861_v40 = vpop.f32.mrf.mxu1 }
 0x7de   : > { %v1843_v41 = vpop.xlane.xlu0 %1842 }
 0x7df   : > { %v1845_v42 = vmul.f32 0.03125, %v1843_v41 }
 0x7e1   : > { %v1846_v43 = vsub.f32 %v1838_v37, %v1845_v42 }
 0x7e3   : > { %v1847_v44 = vmul.f32 %v1846_v43, %v1846_v43 }
 0x7e5   : > { %v1848_v45 = vsel %vm1014_vm2, %v1847_v44, 0.0 }
 0x7e6   : > { %1849 = vadd.xlane.f32.xlu1 %v1848_v45 }
 0x86f   : > { %v1850_v20 = vpop.xlane.xlu1 %1849 }
 0x870   : > { %v1851_v49 = vmul.f32 0.03125, %v1850_v20 }
 0x872   : > { %v1852_v50 = vadd.f32 1e-12, %v1851_v49 }
 0x874   : > { %3002 = vrsqrt.f32 %v1852_v50 }
 0x881   : > { %v3003_v51 = vpop.eup %3002 }
 0x882   : > { %v1854_v53 = vmul.f32 %v3003_v51, %v1846_v43 }
 0x884   : > { %v1861_v55 = vmul.f32 %v2726_v52, %v1854_v53 }
 0x886   : > { %v1868_v56 = vadd.f32 %v2727_v54, %v1861_v55 }
 0x888   : > { %v1869_v57 = vpack.c.bf16 %v1868_v56, %v1868_v56 }
 0x88a   : > { %2867 = vmatmul.mubr.msk.bf16.vlgmr.msra.gmra.mxu0 %vm1014_vm2, %v1869_v57 }
 0x94a   : > { %v1930_v63 = vpop.f32.mrf.mxu0 }
 0x94b   : > { %v1931_v0 = vadd.f32 %v2728_v62, %v1930_v63 }
 0x94c   : > { %v2868_v1 = vpop.f32.mrf.mxu0 }
 0x94d   : > { %v1936_v2 = vmul.f32 %v1931_v0, %v1931_v0 }
 0x94e   : > { %v1933_v3 = vpop.f32.mrf.mxu0 }
 0x94f   : > { %v1937_v4 = vmul.f32 %v1936_v2, %v1931_v0 }
 0x950   : > { %v2869_v5 = vpop.f32.mrf.mxu0 }
 0x951   : > { %v1938_v6 = vmul.f32 0.044715, %v1937_v4 }
 0x953   : > { %v1939_v7 = vadd.f32 %v1938_v6, %v1931_v0 }
 0x955   : > { %v1940_v8 = vmul.f32 0.7978846, %v1939_v7 }
 0x957   : > { %3004 = vtanh.f32 %v1940_v8 }
 0x964   : > { %v3005_v18 = vpop.eup %3004 }
 0x965   : > { %v1942_v9 = vadd.f32 1.0, %v3005_v18 }
 0x967   : > { %v1943_v10 = vmul.f32 0.5, %v1942_v9 }
 0x969   : > { %v1944_v11 = vmul.f32 %v1943_v10, %v1931_v0 }
 0x96b   : > { %v1945_v12 = vpack.c.bf16 %v1944_v11, %v1944_v11 }
 0x96d   : > { %2879 = vmatmul.mubr.msk.bf16.vlgmr.msra.gmra.mxu1 %vm1985_vm6, %v1945_v12 }
 0xa2d   : > { %v2023_v14 = vpop.f32.mrf.mxu1 }
 0xa2e   : > { %v2024_v15 = vadd.f32 %v2732_v13, %v2023_v14 }
 0xa2f   : > { %v2880_v28 = vpop.f32.mrf.mxu1 }
 0xa30   : > { %v2029_v16 = vadd.f32 %v2024_v15, %v1868_v56 }
 0xa31   : > { %v2026_v24 = vpop.f32.mrf.mxu1 }
 0xa32   : > { %v2032_v17 = vsel %vm1014_vm2, %v2029_v16, 0.0 }
 0xa33   : > { %2033 = vadd.xlane.f32.xlu0 %v2032_v17  ;;  %v2881_v19 = vpop.f32.mrf.mxu1 }
 0xabc   : > { %v2034_v21 = vpop.xlane.xlu0 %2033 }
 0xabd   : > { %v2035_v22 = vmul.f32 0.03125, %v2034_v21 }
 0xabf   : > { %v2036_v23 = vsub.f32 %v2029_v16, %v2035_v22 }
 0xac1   : > { %v2037_v25 = vmul.f32 %v2036_v23, %v2036_v23 }
 0xac3   : > { %v2038_v26 = vsel %vm1014_vm2, %v2037_v25, 0.0 }
 0xac4   : > { %2039 = vadd.xlane.f32.xlu0 %v2038_v26 }
 0xb4d   : > { %v2040_v27 = vpop.xlane.xlu0 %2039 }
 0xb4e   : > { %v2041_v29 = vmul.f32 0.03125, %v2040_v27 }
 0xb50   : > { %v2042_v30 = vadd.f32 1e-12, %v2041_v29 }
 0xb52   : > { %3006 = vrsqrt.f32 %v2042_v30 }
 0xb5f   : > { %v3007_v31 = vpop.eup %3006 }
 0xb60   : > { %v2044_v36 = vmul.f32 %v3007_v31, %v2036_v23  ;;  %2062 = sbr.rel (%p2740_p8) target bundleno = 2919 (0xb67), region = 124 }
 0xb62   : > { %v2051_v34 = vmul.f32 %v2738_v32, %v2044_v36 }
 0xb64   : > { %v2058_v35 = vadd.f32 %v2739_v48, %v2051_v34 }
 0xb66   : > { %2063 = vst.msk [vmem:[#allocation2] sm:$0xff] %vm1014_vm2, %v2058_v35 }
 0xb67 PF: > { %s3680_s4 = sld [smem:[#allocation4_spill]] }
 0xb6d   : > { %p2741_p9 = scmp.ne.s32.totalorder %s3680_s4, 1 }
 0xb6e   : > { %s3681_s22 = sld [smem:[#allocation20_spill]] (!%p2741_p9)  ;;  %s3074_s26 = smov (!%p2741_p9), 8  }
 0xb6f   : > { %2067 = sbr.rel (%p2741_p9) target bundleno = 3464 (0xd88), region = 128  ;;  %s3682_s27 = sld [smem:[#allocation22_spill]] (!%p2741_p9) }
 0xb70   : > { %s3684_s21 = sld [smem:[#allocation24_spill]] (!%p2741_p9)  ;;  %s3075_s1 = smov (!%p2741_p9), 16  }
 0xb71   : > { %s3685_s19 = sld [smem:[#allocation23_spill]] (!%p2741_p9) }
 0xb72   : > { %s3686_s18 = sld [smem:[#allocation25_spill]] (!%p2741_p9) }
 0xb73   : > { %s3687_s3 = sld [smem:[#allocation21_spill]] (!%p2741_p9) }
 0xb74   : > { %v3008_v37 = vld [vmem:[%s3681_s22 + $0x8] sm:$0xff]   ;;  %v3072_v38 = vmov 0.0   ;;  %v3010_v40 = vld [vmem:[%s3681_s22] sm:$0xff]   ;;  %vm3073_vm7 = vmmov 0   ;;  %v2147_v41 = vrot.slane %v2058_v35, 1  ;;  %v2068_v43 = vpack.c.bf16 %v2058_v35, %v2058_v35  ;;  %s3688_s8 = sld [smem:[#allocation26_spill]] }
 0xb75   : > { %2882 = vmatprep.subr.bf16.mxu0 %v3072_v38  ;;  %2890 = vmatprep.subr.bf16.mxu1 %v3072_v38  ;;  %s3683_s23 = smov %s3682_s27  ;;  %v3009_v39 = vld [vmem:[%s3682_s27 + $0x18] sm:$0xff]   ;;  %v2394_v52 = vrot.slane %v2058_v35, 2  ;;  %vm2272_vm8 = vcmp.lt.s32.totalorder %v3347_v33, 7  ;;  %vm2466_vm9 = vcmp.lt.s32.totalorder %v3347_v33, 6  ;;  %vm2487_vm10 = vcmask 188416  }
 0xb76   : > { %2883 = vmatpush3.bf16.msra.mxu0 %v3008_v37  ;;  %2886 = vmatprep.mubr.msk.bf16.mxu0 %vm3073_vm7, %v3072_v38  ;;  %v3011_v42 = vld [vmem:[%s3683_s23 + $0x10] sm:$0xff]   ;;  %v2148_v44 = vpack.c.bf16 %v2147_v41, %v2147_v41  ;;  %v3012_v45 = vld [vmem:[%s3683_s23 + $0x8] sm:$0xff]   ;;  %v3013_v46 = vld [vmem:[%s3684_s21 + $0x18] sm:$0xff]   ;;  %vm2499_vm11 = vcmask 0  }
 0xb77   : > { %2891 = vmatpush3.bf16.msra.mxu1 %v3009_v39  ;;  %2884 = vmatprep.subr.bf16.mxu0 %v3072_v38  ;;  %v3014_v47 = vld [vmem:[%s3683_s23] sm:$0xff]   ;;  %v3015_v20 = vld [vmem:[%s3684_s21 + $0x10] sm:$0xff]   ;;  %v3016_v49 = vld [vmem:[%s3684_s21 + $0x8] sm:$0xff]   ;;  %v2395_v54 = vpack.c.bf16 %v2394_v52, %v2394_v52 }
 0xb78   : > { %2892 = vmatprep.subr.bf16.mxu1 %v3072_v38  ;;  %2894 = vmatprep.mubr.msk.bf16.mxu1 %vm3073_vm7, %v3072_v38  ;;  %v3017_v50 = vld [vmem:[%s3684_s21 + $0x28] sm:$0xff]   ;;  %v3018_v51 = vld [vmem:[%s3684_s21] sm:$0xff]  }
 0xb79   : > { %v3019_v53 = vld [vmem:[%s3684_s21 + $0x20] sm:$0xff]  }
 0xb7a   : > { %2885 = vmatpush3.bf16.msra.mxu0 %v3010_v40  ;;  %v2756_v0 = vld [vmem:[%s3685_s19] ss:$0 sm:$0xff] }
 0xb7b   : > { %2893 = vmatpush3.bf16.msra.mxu1 %v3011_v42  ;;  %2898 = vmatprep.subr.bf16.mxu0 %v3072_v38  ;;  %v2774_v28 = vld [vmem:[%s3686_s18] ss:$0 sm:$0xff] }
 0xb7c   : > { %2906 = vmatprep.subr.bf16.mxu1 %v3072_v38  ;;  %v2742_v33 = vld [vmem:[%s3687_s3] ss:$0 sm:$0xff] }
 0xb7d   : > { %2887 = vmatmul.mubr.msk.bf16.vlgmr.msra.gmra.mxu0 %vm1014_vm2, %v2068_v43 }
 0xb7e   : > { %2895 = vmatmul.mubr.msk.bf16.vlgmr.msra.gmra.mxu1 %vm1014_vm2, %v2148_v44  ;;  %2899 = vmatpush3.bf16.msra.mxu0 %v3012_v45 }
 0xb7f   : > { %2907 = vmatpush3.bf16.msra.mxu1 %v3013_v46  ;;  %2900 = vmatprep.subr.bf16.mxu0 %v3072_v38 }
 0xb80   : > { %2908 = vmatprep.subr.bf16.mxu1 %v3072_v38  ;;  %2902 = vmatprep.mubr.msk.bf16.mxu0 %vm3073_vm7, %v3072_v38 }
 0xb81   : > { %2910 = vmatprep.mubr.msk.bf16.mxu1 %vm3073_vm7, %v3072_v38 }
 0xb82   : > { %2901 = vmatpush3.bf16.msra.mxu0 %v3014_v47 }
 0xb83   : > { %2909 = vmatpush3.bf16.msra.mxu1 %v3015_v20  ;;  %2914 = vmatprep.subr.bf16.mxu0 %v3072_v38 }
 0xb84   : > { %2922 = vmatprep.subr.bf16.mxu1 %v3072_v38 }
 0xb85   : > { %2903 = vmatmul.mubr.msk.bf16.vlgmr.msra.gmra.mxu0 %vm1014_vm2, %v2068_v43 }
 0xb86   : > { %2911 = vmatmul.mubr.msk.bf16.vlgmr.msra.gmra.mxu1 %vm1014_vm2, %v2148_v44  ;;  %2915 = vmatpush3.bf16.msra.mxu0 %v3016_v49 }
 0xb87   : > { %2923 = vmatpush3.bf16.msra.mxu1 %v3017_v50  ;;  %2916 = vmatprep.subr.bf16.mxu0 %v3072_v38 }
 0xb88   : > { %2924 = vmatprep.subr.bf16.mxu1 %v3072_v38  ;;  %2918 = vmatprep.mubr.msk.bf16.mxu0 %vm3073_vm7, %v3072_v38 }
 0xb89   : > { %2926 = vmatprep.mubr.msk.bf16.mxu1 %vm3073_vm7, %v3072_v38 }
 0xb8a   : > { %2917 = vmatpush3.bf16.msra.mxu0 %v3018_v51  ;;  %v2485_v51 = vld [vmem:[%s3688_s8] sm:$0x1] }
 0xb8b   : > { %2925 = vmatpush3.bf16.msra.mxu1 %v3019_v53 }
 0xb8d   : > { %2919 = vmatmul.mubr.msk.bf16.vlgmr.msra.gmra.mxu0 %vm1014_vm2, %v2068_v43 }
 0xb8e   : > { %2927 = vmatmul.mubr.msk.bf16.vlgmr.msra.gmra.mxu1 %vm1014_vm2, %v2395_v54 }
 0xc3d   : > { %v2129_v55 = vpop.f32.mrf.mxu0 }
 0xc3e   : > { %v2203_v56 = vpop.f32.mrf.mxu1  ;;  %v2130_v41 = vadd.f32 %v2742_v33, %v2129_v55 }
 0xc3f   : > { %v2888_v57 = vpop.f32.mrf.mxu0 }
 0xc40   : > { %v2896_v58 = vpop.f32.mrf.mxu1  ;;  %v2135_v42 = vmax.f32 %v2130_v41, 0.0  ;;  %v2491_v57 = vld [vmem:[#allocation3] sm:$0x1] }
 0xc41   : > { %v2132_v59 = vpop.f32.mrf.mxu0 }
 0xc42   : > { %v2206_v60 = vpop.f32.mrf.mxu1  ;;  %v2136_v43 = vsel %vm1532_vm4, %v2135_v42, -inf }
 0xc43   : > { %v2889_v61 = vpop.f32.mrf.mxu0  ;;  %v2137_v44 = vrot.slane %v2136_v43, 4 }
 0xc44   : > { %v2897_v62 = vpop.f32.mrf.mxu1 }
 0xc45   : > { %v2255_v63 = vpop.f32.mrf.mxu0  ;;  %v2138_v45 = vmax.f32 %v2136_v43, %v2137_v44 }
 0xc46   : > { %v2256_v1 = vadd.f32 %v2255_v63, %v2203_v56  ;;  %v2336_v2 = vpop.f32.mrf.mxu1 }
 0xc47   : > { %v2904_v3 = vpop.f32.mrf.mxu0  ;;  %v2139_v46 = vrot.slane %v2138_v45, 2 }
 0xc48   : > { %v2268_v4 = vadd.f32 %v2756_v0, %v2256_v1  ;;  %v2912_v5 = vpop.f32.mrf.mxu1 }
 0xc49   : > { %v2258_v6 = vpop.f32.mrf.mxu0  ;;  %v2140_v47 = vmax.f32 %v2138_v45, %v2139_v46 }
 0xc4a   : > { %v2269_v7 = vmax.f32 %v2268_v4, 0.0  ;;  %v2339_v8 = vpop.f32.mrf.mxu1 }
 0xc4b   : > { %v2905_v18 = vpop.f32.mrf.mxu0  ;;  %v2141_v20 = vrot.slane %v2140_v47, 1 }
 0xc4c   : > { %v2273_v9 = vsel %vm2272_vm8, %v2269_v7, -inf  ;;  %v2913_v10 = vpop.f32.mrf.mxu1 }
 0xc4d   : > { %v2274_v11 = vsel %vm1532_vm4, %v2273_v9, -inf  ;;  %v2388_v12 = vpop.f32.mrf.mxu0  ;;  %v2142_v50 = vmax.f32 %v2140_v47, %v2141_v20 }
 0xc4e   : > { %v2275_v13 = vrot.slane %v2274_v11, 4  ;;  %v2389_v14 = vadd.f32 %v2388_v12, %v2336_v2  ;;  %v2450_v15 = vpop.f32.mrf.mxu1 }
 0xc4f   : > { %v2920_v16 = vpop.f32.mrf.mxu0 }
 0xc50   : > { %v2456_v24 = vadd.f32 %v2450_v15, %v2389_v14  ;;  %v2928_v17 = vpop.f32.mrf.mxu1  ;;  %v2276_v19 = vmax.f32 %v2274_v11, %v2275_v13 }
 0xc51   : > { %v2391_v21 = vpop.f32.mrf.mxu0 }
 0xc52   : > { %v2464_v22 = vadd.f32 %v2774_v28, %v2456_v24  ;;  %v2453_v23 = vpop.f32.mrf.mxu1  ;;  %v2277_v25 = vrot.slane %v2276_v19, 2 }
 0xc53   : > { %v2921_v26 = vpop.f32.mrf.mxu0 }
 0xc54   : > { %v2465_v27 = vmax.f32 %v2464_v22, 0.0  ;;  %v2929_v29 = vpop.f32.mrf.mxu1  ;;  %v2278_v30 = vmax.f32 %v2276_v19, %v2277_v25 }
 0xc56   : > { %v2467_v31 = vsel %vm2466_vm9, %v2465_v27, -inf  ;;  %v2279_v32 = vrot.slane %v2278_v30, 1 }
 0xc57   : > { %v2468_v36 = vsel %vm1532_vm4, %v2467_v31, -inf }
 0xc58   : > { %v2469_v48 = vrot.slane %v2468_v36, 4  ;;  %v2280_v34 = vmax.f32 %v2278_v30, %v2279_v32 }
 0xc5a   : > { %v2470_v35 = vmax.f32 %v2468_v36, %v2469_v48  ;;  %2476 = vrot.lane.b32.xlu0 %v2280_v34, %s3074_s26 }
 0xc5c   : > { %v2471_v37 = vrot.slane %v2470_v35, 2 }
 0xc5e   : > { %v2472_v38 = vmax.f32 %v2470_v35, %v2471_v37 }
 0xc60   : > { %v2473_v39 = vrot.slane %v2472_v38, 1 }
 0xc62   : > { %v2474_v40 = vmax.f32 %v2472_v38, %v2473_v39 }
 0xc64   : > { %2480 = vrot.lane.b32.xlu0 %v2474_v40, %s3075_s1 }
 0xccc   : > { %v2477_v49 = vpop.permute.xlu0 %2476 }
 0xccd   : > { %v2483_v52 = vsel %vm1532_vm4, %v2142_v50, %v2477_v49 }
 0xcd6   : > { %v2481_v53 = vpop.permute.xlu0 %2480 }
 0xcd7   : > { %v2484_v54 = vsel %vm1428_vm3, %v2483_v52, %v2481_v53 }
 0xcd8   : > { %v2486_v55 = vmul.f32 %v2485_v51, %v2484_v54 }
 0xcda   : > { %v2488_v56 = vsel %vm2487_vm10, %v2486_v55, 0.0 }
 0xcdb   : > { %2489 = vadd.xlane.f32.xlu1 %v2488_v56 }
 0xd64   : > { %v2490_v58 = vpop.xlane.xlu1 %2489 }
 0xd65   : > { %v2492_v59 = vadd.f32 %v2491_v57, %v2490_v58 }
 0xd67   : > { %v2775_v60 = vmul.f32 -1.442695, %v2492_v59 }
 0xd69   : > { %3020 = vpow2.f32 %v2775_v60 }
 0xd76   : > { %v3021_v61 = vpop.eup %3020 }
 0xd77   : > { %v2496_v62 = vadd.f32 1.0, %v3021_v61 }
 0xd79   : > { %3022 = vrcp.f32 %v2496_v62 }
 0xd86   : > { %v3023_v63 = vpop.eup %3022 }
 0xd87   : > { %2500 = vst.msk [vmem:[%s950_s24] sm:$0x1] %vm2499_vm11, %v3023_v63 }
 0xd88 PF: > { %s3690_s27 = sld [smem:[#allocation7_spill]] }
 0xd89   : > { %s3692_s28 = sld [smem:[#allocation6_spill]] }
 0xd8a   : > { %s3693_s6 = sld [smem:[#allocation8_spill]] }
 0xd8b   : > { %s3694_s2 = sld [smem:[#allocation9_spill]] }
 0xd8e   : > { %s36_s29 = sadd.s32 1, %s3690_s27   ;;  %s3691_s27 = sld [smem:[#allocation5_spill]] }
 0xd8f   : > { %p33_p10 = scmp.ge.s32.totalorder %s36_s29, 6  }
 0xd91   :  { %35 = sbr.rel (!%p33_p10) target bundleno = 18 (0x12), region = 200 }

</bundles_post_ra>
